<compile_context>
chip_gen: v6e
topology: v6e:2x2x1
jax: 0.10.0
libtpu: 0.0.40
codegen_flags: <defaults>
</compile_context>

<pallas_src>
import functools
import math

import jax
import jax.numpy as jnp
from jax.experimental import pallas as pl
from jax.experimental.pallas import tpu as pltpu

_NEG_BIG = -1e30   # finite "-inf" (avoids inf-inf NaNs in the online max update)
_EPS1 = 1e-12      # reference: logits = adc - row_max + 1e-12
_EPS2 = 1e-12      # reference: exp_logits = exp(logits) * logits_mask + 1e-12 (per element)


def _round_up(x, mult):
    return ((x + mult - 1) // mult) * mult


def _supcon_tile_kernel(fa_ref, fc_ref, lab_a_ref, lab_c_ref, out_ref,
                        m_acc, l_acc, num_acc, cnt_acc,
                        *, ta, tc, m_real, base_temperature):
    """One (anchor-tile i, contrast-tile j) step of the online-softmax SupCon loss.

    fa_ref  : [TA, Dp]  temperature-scaled anchor features   (bf16 or f32)
    fc_ref  : [TC, Dp]  temperature-scaled contrast features (bf16 or f32)
    lab_a_ref: [TA, 1]  int32 anchor labels   (pad rows == -1)
    lab_c_ref: [1, TC]  int32 contrast labels (pad cols == -1)
    out_ref : [TA, 128] per-anchor loss, broadcast across lanes (written at last j)
    scratch : running row max / exp-sum / sum(mask*s) / mask count, each [TA, 1] f32
    """
    i = pl.program_id(0)                 # anchor-tile index   ("parallel")
    j = pl.program_id(1)                 # contrast-tile index ("arbitrary", reduction)
    nj = pl.num_programs(1)

    @pl.when(j == 0)
    def _init():
        m_acc[...] = jnp.full((ta, 1), _NEG_BIG, jnp.float32)
        l_acc[...] = jnp.zeros((ta, 1), jnp.float32)
        num_acc[...] = jnp.zeros((ta, 1), jnp.float32)
        cnt_acc[...] = jnp.zeros((ta, 1), jnp.float32)

    # ---- MXU: scaled-similarity tile s[i, j] = <f_i, f_j>/(sqrt(t_i)sqrt(t_j)) ----
    s = jax.lax.dot_general(fa_ref[...], fc_ref[...],
                            (((1,), (1,)), ((), ())),
                            preferred_element_type=jnp.float32)        # [TA, TC] f32

    lab_a = lab_a_ref[...]                                             # [TA, 1] i32
    lab_c = lab_c_ref[...]                                             # [1, TC] i32
    col_ok = lab_c >= 0                                                # pad cols -> False

    # Self-contrast (diagonal) removal with a single tile-sized iota:
    #   global_row != global_col  <=>  rid != cid + (j*TC - i*TA)
    rid = jax.lax.broadcasted_iota(jnp.int32, (ta, tc), 0)             # local row ids
    col_shift = jax.lax.broadcasted_iota(jnp.int32, (1, tc), 1) + (j * tc - i * ta)
    not_self = rid != col_shift                                        # [TA, TC] bool
    valid = jnp.logical_and(col_ok, not_self)                          # non-self real cols

    # ---- online row max over valid columns (diagonal included, as in the ref) ----
    s_valid = jnp.where(col_ok, s, _NEG_BIG)                           # [TA, TC]
    m_prev = m_acc[...]
    m_new = jnp.maximum(m_prev, jnp.max(s_valid, axis=1, keepdims=True))
    alpha = jnp.exp(m_prev - m_new)                                    # rescale old sum

    # denominator pieces: sum exp(s - max) over valid, non-self columns.
    # (guard with `valid`, not just `not_self`, so all-pad contrast tiles are inert)
    e = jnp.where(valid, jnp.exp(s_valid - m_new), 0.0)                # [TA, TC]
    l_acc[...] = alpha * l_acc[...] + jnp.sum(e, axis=1, keepdims=True)
    m_acc[...] = m_new

    # numerator pieces: mask-weighted raw logits + positive counts (max-free => exact)
    pos = jnp.where(jnp.logical_and(lab_a == lab_c, valid), 1.0, 0.0)  # [TA, TC] f32
    num_acc[...] += jnp.sum(pos * s, axis=1, keepdims=True)
    cnt_acc[...] += jnp.sum(pos, axis=1, keepdims=True)

    # ---- finalize once per anchor tile -------------------------------------------
    @pl.when(j == nj - 1)
    def _finalize():
        l = l_acc[...]
        p = cnt_acc[...]
        m_fin = m_acc[...]
        # denom = sum_j exp(s - max + eps1) * logits_mask + M * eps2   (matches ref)
        denom = l * jnp.float32(math.exp(_EPS1)) + jnp.float32(m_real * _EPS2)
        # sum_j mask * log_prob = sum(mask*s) - mask_sum*(max - eps1 + log(denom))
        num = num_acc[...] - p * (m_fin - jnp.float32(_EPS1) + jnp.log(denom))
        safe_p = jnp.where(p == 0.0, 1.0, p)
        mlpp = jnp.where(p == 0.0, 0.0, num / safe_p)                  # exact div: [TA,1] only
        row_valid = (lab_a >= 0).astype(jnp.float32)                   # zero pad anchors
        loss_row = (-jnp.float32(1.0 / base_temperature)) * mlpp * row_valid
        out_ref[...] = jnp.broadcast_to(loss_row, (ta, 128))           # lane-dense store


def weighted_supcon_loss(features, labels, temperature_per_class,
                         base_temperature=0.07,
                         matmul_dtype=jnp.bfloat16,
                         anchor_tile=256, contrast_tile=512):
    """features: [bsz, n_views, dim], labels: [bsz] int, temps: [num_classes] f32.

    matmul_dtype=jnp.bfloat16 -> native-MXU fast path (f32 accumulate + f32 softmax).
    matmul_dtype=jnp.float32  -> reference-accuracy path.
    anchor_tile/contrast_tile sized for v7x's 64 MiB VMEM; raise contrast_tile on v6e.
    """
    if features.ndim < 3:
        raise ValueError("`features` must be [bsz, n_views, ...]")
    if features.ndim > 3:
        features = features.reshape(features.shape[0], features.shape[1], -1)
    n, v, d = features.shape
    m = n * v

    # torch.cat(torch.unbind(features, dim=1), dim=0): view-major [M, D]
    cf = jnp.transpose(features, (1, 0, 2)).reshape(m, d).astype(jnp.float32)

    # symmetric 1/sqrt(t_i) scaling, tiled across views (see NOTE above)
    inv_sqrt_t = 1.0 / jnp.sqrt(temperature_per_class[labels].astype(jnp.float32))
    inv_sqrt_t = jnp.tile(inv_sqrt_t, v).reshape(m, 1)
    fs = cf * inv_sqrt_t
    lab = jnp.tile(labels.astype(jnp.int32), v)

    # ---- pad to MXU/lane-friendly shapes (pad rows/cols carry label -1) ----------
    dp = _round_up(d, 128)                       # lane-dense feature dim
    mp0 = _round_up(m, 128)
    ta = min(int(anchor_tile), mp0)              # multiple of 128 by construction
    tc = min(int(contrast_tile), mp0)
    mp = _round_up(mp0, math.lcm(ta, tc))

    fs_p = jnp.zeros((mp, dp), jnp.float32).at[:m, :d].set(fs).astype(matmul_dtype)
    lab_p = jnp.full((mp,), -1, jnp.int32).at[:m].set(lab)
    lab_col = lab_p.reshape(mp, 1)
    lab_row = lab_p.reshape(1, mp)

    grid = (mp // ta, mp // tc)
    kernel = functools.partial(_supcon_tile_kernel, ta=ta, tc=tc, m_real=m,
                               base_temperature=float(base_temperature))

    per_anchor = pl.pallas_call(
        kernel,
        out_shape=jax.ShapeDtypeStruct((mp, 128), jnp.float32),
        grid=grid,
        in_specs=[
            pl.BlockSpec((ta, dp), lambda i, j: (i, 0)),   # anchor features
            pl.BlockSpec((tc, dp), lambda i, j: (j, 0)),   # contrast features
            pl.BlockSpec((ta, 1), lambda i, j: (i, 0)),    # anchor labels
            pl.BlockSpec((1, tc), lambda i, j: (0, j)),    # contrast labels
        ],
        out_specs=pl.BlockSpec((ta, 128), lambda i, j: (i, 0)),
        scratch_shapes=[pltpu.VMEM((ta, 1), jnp.float32)] * 4,
        compiler_params=pltpu.CompilerParams(
            dimension_semantics=("parallel", "arbitrary")),
    )(fs_p, fs_p, lab_col, lab_row)

    # pad anchors contribute exactly 0; reference takes the mean over the M real anchors.
    return jnp.sum(per_anchor[:, 0]) * (1.0 / m)


def weighted_supcon_loss_ref(features, labels, temperature_per_class,
                             base_temperature=0.07):
    """Pure-JAX reference mirroring the PyTorch forward (contrast_mode='all')."""
    n, v = features.shape[0], features.shape[1]
    features = features.reshape(n, v, -1)
    d = features.shape[-1]
    m = n * v
    cf = jnp.transpose(features, (1, 0, 2)).reshape(m, d).astype(jnp.float32)
    t_rep = jnp.tile(jnp.sqrt(temperature_per_class[labels]), v).reshape(m, 1)
    scaled = cf / t_rep
    adc = jnp.matmul(scaled, scaled.T, precision=jax.lax.Precision.HIGHEST)
    logits = adc - jnp.max(adc, axis=1, keepdims=True) + 1e-12
    lab = jnp.tile(labels, v)
    mask = (lab[:, None] == lab[None, :]).astype(jnp.float32)
    logits_mask = 1.0 - jnp.eye(m, dtype=jnp.float32)
    mask = mask * logits_mask
    exp_logits = jnp.exp(logits) * logits_mask + 1e-12
    log_prob = logits - jnp.log(jnp.sum(exp_logits, axis=1, keepdims=True))
    mask_sum = mask.sum(1)
    safe = jnp.where(mask_sum == 0.0, 1.0, mask_sum)
    mlpp = jnp.where(mask_sum == 0.0, 0.0, (mask * log_prob).sum(1) / safe)
    return jnp.mean(-(mlpp / base_temperature))


if __name__ == "__main__":
    num_classes = 10
    bsz, n_views, dim = 8, 2, 32

    key = jax.random.PRNGKey(0)
    k_feat, k_lab = jax.random.split(key)
    features = jax.random.normal(k_feat, (bsz, n_views, dim), dtype=jnp.float32)
    # L2-normalize features (typical SupCon input; does not change kernel semantics)
    features = features / jnp.linalg.norm(features, axis=-1, keepdims=True)
    labels = jax.random.randint(k_lab, (bsz,), 0, num_classes)
    temperature_per_class = 0.07 + 0.01 * jnp.arange(num_classes, dtype=jnp.float32)

    loss_ref = weighted_supcon_loss_ref(features, labels, temperature_per_class, 0.07)
    loss_ref = jax.block_until_ready(loss_ref)

    # f32-matmul path: tight check (tolerance covers MXU f32-emulation pass count and
    # tilewise accumulation-order differences vs the HIGHEST-precision XLA reference).
    loss_f32 = weighted_supcon_loss(features, labels, temperature_per_class,
                                    base_temperature=0.07,
                                    matmul_dtype=jnp.float32)
    loss_f32 = jax.block_until_ready(loss_f32)
    assert jnp.isfinite(loss_f32), loss_f32
    assert jnp.allclose(loss_f32, loss_ref, rtol=1e-2, atol=1e-2), (loss_f32, loss_ref)

    # default fast path: bf16 MXU inputs, f32 accumulate/softmax — loose sanity check.
    loss_bf16 = weighted_supcon_loss(features, labels, temperature_per_class,
                                     base_temperature=0.07,
                                     matmul_dtype=jnp.bfloat16)
    loss_bf16 = jax.block_until_ready(loss_bf16)
    assert jnp.isfinite(loss_bf16), loss_bf16
    assert jnp.allclose(loss_bf16, loss_ref, rtol=1e-1, atol=1e-1), (loss_bf16, loss_ref)

    print("KERNEL_OK")
</pallas_src>

<mosaic_0001>
module attributes {stable_mosaic.version = 11 : i64} {
  func.func @_supcon_tile_kernel(%arg0: i32, %arg1: i32, %arg2: memref<128x128xf32, #tpu.memory_space<vmem>>, %arg3: memref<128x128xf32, #tpu.memory_space<vmem>>, %arg4: memref<128x1xi32, #tpu.memory_space<vmem>>, %arg5: memref<1x128xi32, #tpu.memory_space<vmem>>, %arg6: memref<128x128xf32, #tpu.memory_space<vmem>>, %arg7: memref<128x1xf32, #tpu.memory_space<vmem>>, %arg8: memref<128x1xf32, #tpu.memory_space<vmem>>, %arg9: memref<128x1xf32, #tpu.memory_space<vmem>>, %arg10: memref<128x1xf32, #tpu.memory_space<vmem>>) attributes {dimension_semantics = [#tpu.dimension_semantics<parallel>, #tpu.dimension_semantics<arbitrary>], iteration_bounds = array<i64: 1, 1>, scalar_prefetch = 0 : i64, scratch_operands = 4 : i64, tpu.core_type = #tpu.core_type<tc>, window_params = [{transform_indices = @transform_0, window_bounds = array<i64: 128, 128>}, {transform_indices = @transform_1, window_bounds = array<i64: 128, 128>}, {transform_indices = @transform_2, window_bounds = array<i64: 128, 1>}, {transform_indices = @transform_3, window_bounds = array<i64: 1, 128>}, {transform_indices = @transform_4, window_bounds = array<i64: 128, 128>}]} {
    %c0_i32 = arith.constant 0 : i32
    %0 = arith.cmpi eq, %arg1, %c0_i32 : i32
    %1 = arith.extui %0 : i1 to i32
    %c0_i32_0 = arith.constant 0 : i32
    %2 = arith.cmpi ne, %1, %c0_i32_0 : i32
    scf.if %2 {
      %cst_36 = arith.constant -1.000000e+30 : f32
      %64 = vector.broadcast %cst_36 : f32 to vector<128x1xf32>
      %c0_37 = arith.constant 0 : index
      %c0_38 = arith.constant 0 : index
      %65 = vector.load %arg7[%c0_37, %c0_38] : memref<128x1xf32, #tpu.memory_space<vmem>>, vector<128x1xf32>
      tpu.vector_store %arg7[%c0_37, %c0_38], %64 {strides = array<i32>} : memref<128x1xf32, #tpu.memory_space<vmem>>, vector<128x1xf32>,
      %cst_39 = arith.constant 0.000000e+00 : f32
      %66 = vector.broadcast %cst_39 : f32 to vector<128x1xf32>
      %c0_40 = arith.constant 0 : index
      %c0_41 = arith.constant 0 : index
      %67 = vector.load %arg8[%c0_40, %c0_41] : memref<128x1xf32, #tpu.memory_space<vmem>>, vector<128x1xf32>
      tpu.vector_store %arg8[%c0_40, %c0_41], %66 {strides = array<i32>} : memref<128x1xf32, #tpu.memory_space<vmem>>, vector<128x1xf32>,
      %cst_42 = arith.constant 0.000000e+00 : f32
      %68 = vector.broadcast %cst_42 : f32 to vector<128x1xf32>
      %c0_43 = arith.constant 0 : index
      %c0_44 = arith.constant 0 : index
      %69 = vector.load %arg9[%c0_43, %c0_44] : memref<128x1xf32, #tpu.memory_space<vmem>>, vector<128x1xf32>
      tpu.vector_store %arg9[%c0_43, %c0_44], %68 {strides = array<i32>} : memref<128x1xf32, #tpu.memory_space<vmem>>, vector<128x1xf32>,
      %cst_45 = arith.constant 0.000000e+00 : f32
      %70 = vector.broadcast %cst_45 : f32 to vector<128x1xf32>
      %c0_46 = arith.constant 0 : index
      %c0_47 = arith.constant 0 : index
      %71 = vector.load %arg10[%c0_46, %c0_47] : memref<128x1xf32, #tpu.memory_space<vmem>>, vector<128x1xf32>
      tpu.vector_store %arg10[%c0_46, %c0_47], %70 {strides = array<i32>} : memref<128x1xf32, #tpu.memory_space<vmem>>, vector<128x1xf32>,
    } else {
    }
    %c0 = arith.constant 0 : index
    %c0_1 = arith.constant 0 : index
    %3 = vector.load %arg2[%c0, %c0_1] : memref<128x128xf32, #tpu.memory_space<vmem>>, vector<128x128xf32>
    %c0_2 = arith.constant 0 : index
    %c0_3 = arith.constant 0 : index
    %4 = vector.load %arg3[%c0_2, %c0_3] : memref<128x128xf32, #tpu.memory_space<vmem>>, vector<128x128xf32>
    %cst = arith.constant dense<0.000000e+00> : vector<128x128xf32>
    %5 = tpu.matmul %3, %4, %cst {dimension_numbers = #tpu.dot_dimension_numbers<[1], [1], [0], [0], [0, 0, 1, 0], [], []>} : vector<128x128xf32>, vector<128x128xf32>, vector<128x128xf32> -> vector<128x128xf32>
    %c0_4 = arith.constant 0 : index
    %c0_5 = arith.constant 0 : index
    %6 = vector.load %arg4[%c0_4, %c0_5] : memref<128x1xi32, #tpu.memory_space<vmem>>, vector<128x1xi32>
    %c0_6 = arith.constant 0 : index
    %c0_7 = arith.constant 0 : index
    %7 = vector.load %arg5[%c0_6, %c0_7] : memref<1x128xi32, #tpu.memory_space<vmem>>, vector<1x128xi32>
    %c0_i32_8 = arith.constant 0 : i32
    %8 = vector.broadcast %c0_i32_8 : i32 to vector<1x128xi32>
    %9 = arith.cmpi sge, %7, %8 : vector<1x128xi32>
    %10 = tpu.iota {dimensions = array<i32: 0>} : vector<128x128xi32>
    %11 = tpu.iota {dimensions = array<i32: 1>} : vector<1x128xi32>
    %c128_i32 = arith.constant 128 : i32
    %12 = arith.muli %arg1, %c128_i32 : i32
    %c128_i32_9 = arith.constant 128 : i32
    %13 = arith.muli %arg0, %c128_i32_9 : i32
    %14 = arith.subi %12, %13 : i32
    %15 = vector.broadcast %14 : i32 to vector<1x128xi32>
    %16 = arith.addi %11, %15 : vector<1x128xi32>
    %17 = vector.broadcast %16 : vector<1x128xi32> to vector<128x128xi32>
    %18 = arith.cmpi ne, %10, %17 : vector<128x128xi32>
    %19 = vector.broadcast %9 : vector<1x128xi1> to vector<128x128xi1>
    %20 = arith.andi %19, %18 : vector<128x128xi1>
    %cst_10 = arith.constant -1.000000e+30 : f32
    %21 = vector.shape_cast %9 : vector<1x128xi1> to vector<1x128xi1>
    %22 = vector.broadcast %21 : vector<1x128xi1> to vector<128x128xi1>
    %23 = vector.broadcast %cst_10 : f32 to vector<128x128xf32>
    %24 = arith.select %22, %5, %23 : vector<128x128xi1>, vector<128x128xf32>
    %c0_11 = arith.constant 0 : index
    %c0_12 = arith.constant 0 : index
    %25 = vector.load %arg7[%c0_11, %c0_12] : memref<128x1xf32, #tpu.memory_space<vmem>>, vector<128x1xf32>
    %cst_13 = arith.constant dense<0xFF800000> : vector<128xf32>
    %26 = vector.multi_reduction <maximumf>, %24, %cst_13 [1] : vector<128x128xf32> to vector<128xf32>
    %27 = vector.shape_cast %26 : vector<128xf32> to vector<128x1xf32>
    %28 = arith.maximumf %25, %27 : vector<128x1xf32>
    %29 = arith.subf %25, %28 : vector<128x1xf32>
    %30 = math.exp %29 : vector<128x1xf32>
    %31 = vector.broadcast %28 : vector<128x1xf32> to vector<128x128xf32>
    %32 = arith.subf %24, %31 : vector<128x128xf32>
    %33 = math.exp %32 : vector<128x128xf32>
    %cst_14 = arith.constant 0.000000e+00 : f32
    %34 = vector.broadcast %cst_14 : f32 to vector<128x128xf32>
    %35 = arith.select %20, %33, %34 : vector<128x128xi1>, vector<128x128xf32>
    %c0_15 = arith.constant 0 : index
    %c0_16 = arith.constant 0 : index
    %36 = vector.load %arg8[%c0_15, %c0_16] : memref<128x1xf32, #tpu.memory_space<vmem>>, vector<128x1xf32>
    %37 = arith.mulf %30, %36 : vector<128x1xf32>
    %cst_17 = arith.constant dense<0.000000e+00> : vector<128xf32>
    %38 = vector.multi_reduction <add>, %35, %cst_17 [1] : vector<128x128xf32> to vector<128xf32>
    %39 = vector.shape_cast %38 : vector<128xf32> to vector<128x1xf32>
    %40 = arith.addf %37, %39 : vector<128x1xf32>
    %c0_18 = arith.constant 0 : index
    %c0_19 = arith.constant 0 : index
    %41 = vector.load %arg8[%c0_18, %c0_19] : memref<128x1xf32, #tpu.memory_space<vmem>>, vector<128x1xf32>
    tpu.vector_store %arg8[%c0_18, %c0_19], %40 {strides = array<i32>} : memref<128x1xf32, #tpu.memory_space<vmem>>, vector<128x1xf32>,
    %c0_20 = arith.constant 0 : index
    %c0_21 = arith.constant 0 : index
    %42 = vector.load %arg7[%c0_20, %c0_21] : memref<128x1xf32, #tpu.memory_space<vmem>>, vector<128x1xf32>
    tpu.vector_store %arg7[%c0_20, %c0_21], %28 {strides = array<i32>} : memref<128x1xf32, #tpu.memory_space<vmem>>, vector<128x1xf32>,
    %43 = vector.broadcast %6 : vector<128x1xi32> to vector<128x128xi32>
    %44 = vector.broadcast %7 : vector<1x128xi32> to vector<128x128xi32>
    %45 = arith.cmpi eq, %43, %44 : vector<128x128xi32>
    %46 = arith.andi %45, %20 : vector<128x128xi1>
    %cst_22 = arith.constant 1.000000e+00 : f32
    %cst_23 = arith.constant 0.000000e+00 : f32
    %47 = vector.broadcast %cst_22 : f32 to vector<128x128xf32>
    %48 = vector.broadcast %cst_23 : f32 to vector<128x128xf32>
    %49 = arith.select %46, %47, %48 : vector<128x128xi1>, vector<128x128xf32>
    %c0_24 = arith.constant 0 : index
    %c0_25 = arith.constant 0 : index
    %50 = vector.load %arg9[%c0_24, %c0_25] : memref<128x1xf32, #tpu.memory_space<vmem>>, vector<128x1xf32>
    %51 = arith.mulf %49, %5 : vector<128x128xf32>
    %cst_26 = arith.constant dense<0.000000e+00> : vector<128xf32>
    %52 = vector.multi_reduction <add>, %51, %cst_26 [1] : vector<128x128xf32> to vector<128xf32>
    %53 = vector.shape_cast %52 : vector<128xf32> to vector<128x1xf32>
    %54 = arith.addf %50, %53 : vector<128x1xf32>
    %c0_27 = arith.constant 0 : index
    %c0_28 = arith.constant 0 : index
    %55 = vector.load %arg9[%c0_27, %c0_28] : memref<128x1xf32, #tpu.memory_space<vmem>>, vector<128x1xf32>
    tpu.vector_store %arg9[%c0_27, %c0_28], %54 {strides = array<i32>} : memref<128x1xf32, #tpu.memory_space<vmem>>, vector<128x1xf32>,
    %c0_29 = arith.constant 0 : index
    %c0_30 = arith.constant 0 : index
    %56 = vector.load %arg10[%c0_29, %c0_30] : memref<128x1xf32, #tpu.memory_space<vmem>>, vector<128x1xf32>
    %cst_31 = arith.constant dense<0.000000e+00> : vector<128xf32>
    %57 = vector.multi_reduction <add>, %49, %cst_31 [1] : vector<128x128xf32> to vector<128xf32>
    %58 = vector.shape_cast %57 : vector<128xf32> to vector<128x1xf32>
    %59 = arith.addf %56, %58 : vector<128x1xf32>
    %c0_32 = arith.constant 0 : index
    %c0_33 = arith.constant 0 : index
    %60 = vector.load %arg10[%c0_32, %c0_33] : memref<128x1xf32, #tpu.memory_space<vmem>>, vector<128x1xf32>
    tpu.vector_store %arg10[%c0_32, %c0_33], %59 {strides = array<i32>} : memref<128x1xf32, #tpu.memory_space<vmem>>, vector<128x1xf32>,
    %c0_i32_34 = arith.constant 0 : i32
    %61 = arith.cmpi eq, %arg1, %c0_i32_34 : i32
    %62 = arith.extui %61 : i1 to i32
    %c0_i32_35 = arith.constant 0 : i32
    %63 = arith.cmpi ne, %62, %c0_i32_35 : i32
    scf.if %63 {
      %c0_36 = arith.constant 0 : index
      %c0_37 = arith.constant 0 : index
      %64 = vector.load %arg8[%c0_36, %c0_37] : memref<128x1xf32, #tpu.memory_space<vmem>>, vector<128x1xf32>
      %c0_38 = arith.constant 0 : index
      %c0_39 = arith.constant 0 : index
      %65 = vector.load %arg10[%c0_38, %c0_39] : memref<128x1xf32, #tpu.memory_space<vmem>>, vector<128x1xf32>
      %c0_40 = arith.constant 0 : index
      %c0_41 = arith.constant 0 : index
      %66 = vector.load %arg7[%c0_40, %c0_41] : memref<128x1xf32, #tpu.memory_space<vmem>>, vector<128x1xf32>
      %cst_42 = arith.constant 1.000000e+00 : f32
      %67 = vector.broadcast %cst_42 : f32 to vector<128x1xf32>
      %68 = arith.mulf %64, %67 : vector<128x1xf32>
      %cst_43 = arith.constant 1.600000e-11 : f32
      %69 = vector.broadcast %cst_43 : f32 to vector<128x1xf32>
      %70 = arith.addf %68, %69 : vector<128x1xf32>
      %c0_44 = arith.constant 0 : index
      %c0_45 = arith.constant 0 : index
      %71 = vector.load %arg9[%c0_44, %c0_45] : memref<128x1xf32, #tpu.memory_space<vmem>>, vector<128x1xf32>
      %cst_46 = arith.constant 9.99999996E-13 : f32
      %72 = vector.broadcast %cst_46 : f32 to vector<128x1xf32>
      %73 = arith.subf %66, %72 : vector<128x1xf32>
      %74 = math.log %70 : vector<128x1xf32>
      %75 = arith.addf %73, %74 : vector<128x1xf32>
      %76 = arith.mulf %65, %75 : vector<128x1xf32>
      %77 = arith.subf %71, %76 : vector<128x1xf32>
      %cst_47 = arith.constant 0.000000e+00 : f32
      %78 = vector.broadcast %cst_47 : f32 to vector<128x1xf32>
      %79 = arith.cmpf oeq, %65, %78 : vector<128x1xf32>
      %cst_48 = arith.constant 1.000000e+00 : f32
      %80 = vector.broadcast %cst_48 : f32 to vector<128x1xf32>
      %81 = arith.select %79, %80, %65 : vector<128x1xi1>, vector<128x1xf32>
      %cst_49 = arith.constant 0.000000e+00 : f32
      %82 = vector.broadcast %cst_49 : f32 to vector<128x1xf32>
      %83 = arith.cmpf oeq, %65, %82 : vector<128x1xf32>
      %84 = arith.divf %77, %81 : vector<128x1xf32>
      %cst_50 = arith.constant 0.000000e+00 : f32
      %85 = vector.broadcast %cst_50 : f32 to vector<128x1xf32>
      %86 = arith.select %83, %85, %84 : vector<128x1xi1>, vector<128x1xf32>
      %c0_i32_51 = arith.constant 0 : i32
      %87 = vector.broadcast %c0_i32_51 : i32 to vector<128x1xi32>
      %88 = arith.cmpi sge, %6, %87 : vector<128x1xi32>
      %89 = arith.extui %88 : vector<128x1xi1> to vector<128x1xi32>
      %90 = arith.sitofp %89 : vector<128x1xi32> to vector<128x1xf32>
      %cst_52 = arith.constant 0.000000e+00 : f32
      %cst_53 = arith.constant 14.2857141 : f32
      %91 = arith.subf %cst_52, %cst_53 : f32
      %92 = vector.broadcast %91 : f32 to vector<128x1xf32>
      %93 = arith.mulf %92, %86 : vector<128x1xf32>
      %94 = arith.mulf %93, %90 : vector<128x1xf32>
      %95 = vector.shape_cast %94 : vector<128x1xf32> to vector<128x1xf32>
      %96 = vector.broadcast %95 : vector<128x1xf32> to vector<128x128xf32>
      %c0_54 = arith.constant 0 : index
      %c0_55 = arith.constant 0 : index
      %97 = vector.load %arg6[%c0_54, %c0_55] : memref<128x128xf32, #tpu.memory_space<vmem>>, vector<128x128xf32>
      tpu.vector_store %arg6[%c0_54, %c0_55], %96 {strides = array<i32>} : memref<128x128xf32, #tpu.memory_space<vmem>>, vector<128x128xf32>,
    } else {
    }
    return
  }
  func.func @transform_0(%arg0: i32, %arg1: i32) -> (i32, i32) {
    %c0_i32 = arith.constant 0 : i32
    %c0_i32_0 = arith.constant 0 : i32
    return %arg0, %c0_i32 : i32, i32
  }
  func.func @transform_1(%arg0: i32, %arg1: i32) -> (i32, i32) {
    %c0_i32 = arith.constant 0 : i32
    %c0_i32_0 = arith.constant 0 : i32
    return %arg1, %c0_i32 : i32, i32
  }
  func.func @transform_2(%arg0: i32, %arg1: i32) -> (i32, i32) {
    %c0_i32 = arith.constant 0 : i32
    %c0_i32_0 = arith.constant 0 : i32
    return %arg0, %c0_i32 : i32, i32
  }
  func.func @transform_3(%arg0: i32, %arg1: i32) -> (i32, i32) {
    %c0_i32 = arith.constant 0 : i32
    %c0_i32_0 = arith.constant 0 : i32
    return %c0_i32, %arg1 : i32, i32
  }
  func.func @transform_4(%arg0: i32, %arg1: i32) -> (i32, i32) {
    %c0_i32 = arith.constant 0 : i32
    %c0_i32_0 = arith.constant 0 : i32
    return %arg0, %c0_i32 : i32, i32
  }
}

</mosaic_0001>

<bundles_post_ra>
// kernel: tpu_custom_call.1
= control target key start
LH: loop header
LB: loop body
LE: loop exit
PB: predicated region body
PF: predicated region fallthrough
CT: control target
= control target key end

     0   :  { %9 = vsyncpa [#allocation7], 0  ;;  %s3127_s0 = inlined_call_operand.vmem [shape: f32[128,128], index: 0, kind: input, shape index: {}]   ;;  %s3128_s1 = inlined_call_operand.hbm [shape: f32[128,128], index: 1, kind: input, shape index: {}]   ;;  %s3129_s2 = inlined_call_operand.vmem [shape: s32[128,1], index: 2, kind: input, shape index: {}]   ;;  %s3130_s3 = inlined_call_operand.vmem [shape: s32[1,128], index: 3, kind: input, shape index: {}]   ;;  %s3131_s4 = inlined_call_operand.hbm [shape: f32[128,128], index: 4, kind: output, shape index: {}]  }
   0x1   :  { %10 = vsyncpa [#allocation8], 0  ;;  %s1820_s15 = smov [#allocation6]  }
   0x2   :  { %s18_s16 = sshll.u32 %s1820_s15, 4  ;;  %s19_s16 = int_to_ptr.vmem [resolvable:$true] %s18_s16 }
   0x3   :  { %s1784_s17 = scalar_lea.vmem %s19_s16, 2048  ;;  %p1789_p1 = scmp.lt.s32.totalorder %s19_s16, %s19_s16 }
   0x4   :  { %p1785_p0 = scmp.ne.s32.totalorder %s19_s16, %s1784_s17  ;;  %p1790_p2 = scmp.lt.s32.totalorder %s1784_s17, %s1784_s17 }
   0x6   :  { %p1791_p3 = por %p1790_p2, %p1789_p1 }
   0x8   :  { %p1792_p4 = pnand %p1791_p3, %p1785_p0 }
   0xa   :  { %1795 = shalt.err (!%p1792_p4)
}
   0xb   :  { %s1821_s18 = smov 128   ;;  %s1822_s19 = smov 8  }
   0xc   :  { %24 = dma.hbm_to_vmem [thread:$0]  %s3128_s1, 2048, %s19_s16, [#allocation7], %s1821_s18, %s1821_s18, %s1822_s19  }
   0xd   :  { %1816 = dma.done.wait [#allocation7], 2048  }
   0xe   :  { %1817 = vsyncadd [#allocation7], 4294965248  ;;  %v1823_v0 = vmov 0   ;;  %v132_v1 = vld [vmem:[#allocation6 + $0x78] sm:$0xff]  ;;  %v131_v2 = vld [vmem:[#allocation6 + $0x70] sm:$0xff]  ;;  %v296_v43 = vlaneseq  ;;  %v3132_v55 = vmov 0.0  }
   0xf   :  { %1631 = vset.pattern.permute.xlu1 %v1823_v0  ;;  %1630 = vset.pattern.permute.xlu0 %v1823_v0  ;;  %v130_v3 = vld [vmem:[#allocation6 + $0x68] sm:$0xff]  ;;  %v101_v4 = vld [vmem:[%s3127_s0] sm:$0xff]  ;;  %v128_v8 = vld [vmem:[#allocation6 + $0x58] sm:$0xff]  ;;  %vm3162_vm14 = vcmask 7168   ;;  %v1825_v63 = vmov -1e+30  }
  0x10   :  { %1535 = vmatprep.subr.mxu0 %v132_v1  ;;  %1591 = vmatprep.subr.mxu1 %v132_v1  ;;  %v109_v5 = vld [vmem:[%s3127_s0 + $0x40] sm:$0xff]  ;;  %v279_v7 = vld [vmem:[%s3129_s2 + $0x8] sm:$0xff]  ;;  %v280_v9 = vld [vmem:[%s3129_s2 + $0x10] sm:$0xff]  ;;  %v1941_v45 = vshrl.u32 %v296_v43, 7  ;;  %v1948_v50 = vand.u32 127, %v296_v43  ;;  %86 = vst.msk [vmem:[#allocation5 + $0x8] sm:$0xff] %vm3162_vm14, %v3132_v55 }
  0x11   :  { %1536 = vmatpush3.xpose.msra.mxu0 %v132_v1  ;;  %1607 = vmatpush3.xpose.msra.mxu1 %v132_v1  ;;  %v129_v6 = vld [vmem:[#allocation6 + $0x60] sm:$0xff]  ;;  %v127_v11 = vld [vmem:[#allocation6 + $0x50] sm:$0xff]  ;;  %v281_v13 = vld [vmem:[%s3129_s2 + $0x18] sm:$0xff]  ;;  %53 = vst.msk [vmem:[#allocation3] sm:$0xff] %vm3162_vm14, %v3132_v55 }
  0x12   :  { %1537 = vmatprep.subr.mxu0 %v131_v2  ;;  %1592 = vmatprep.subr.mxu1 %v131_v2  ;;  %v278_v10 = vld [vmem:[%s3129_s2] sm:$0xff]  ;;  %v126_v14 = vld [vmem:[#allocation6 + $0x48] sm:$0xff]  ;;  %v284_v15 = vld [vmem:[%s3129_s2 + $0x30] sm:$0xff]  ;;  %v339_v46 = vsub.s32 0, %v1941_v45  ;;  %v298_v49 = vadd.s32 8, %v1941_v45  ;;  %v299_v51 = vadd.s32 16, %v1941_v45  ;;  %vm320_vm6 = vcmp.ne.s32.totalorder %v1941_v45, %v1948_v50 }
  0x13   :  { %1567 = vmatprep.mubr.f32.mxu0 %v101_v4  ;;  %1579 = vmatprep.mubr.f32.mxu1 %v109_v5  ;;  %v282_v12 = vld [vmem:[%s3129_s2 + $0x20] sm:$0xff]  ;;  %v124_v18 = vld [vmem:[#allocation6 + $0x38] sm:$0xff]  ;;  %v288_v19 = vld [vmem:[%s3129_s2 + $0x50] sm:$0xff]  ;;  %54 = vst.msk [vmem:[#allocation3 + $0x8] sm:$0xff] %vm3162_vm14, %v3132_v55 }
  0x14   :  { %747 = vperm.xlu1 %1631, %v279_v7   ;;  %744 = vperm.xlu0 %1630, %v278_v10   ;;  %v125_v16 = vld [vmem:[#allocation6 + $0x40] sm:$0xff]  ;;  %v123_v20 = vld [vmem:[#allocation6 + $0x30] sm:$0xff]  ;;  %v122_v22 = vld [vmem:[#allocation6 + $0x28] sm:$0xff]  ;;  %vm321_vm2 = vcmp.ne.s32.totalorder %v298_v49, %v1948_v50  ;;  %vm322_vm4 = vcmp.ne.s32.totalorder %v299_v51, %v1948_v50  ;;  %55 = vst.msk [vmem:[#allocation3 + $0x10] sm:$0xff] %vm3162_vm14, %v3132_v55 }
  0x15   :  { %1538 = vmatpush3.xpose.msra.mxu0 %v131_v2  ;;  %1608 = vmatpush3.xpose.msra.mxu1 %v131_v2  ;;  %v286_v17 = vld [vmem:[%s3129_s2 + $0x40] sm:$0xff]  ;;  %v292_v23 = vld [vmem:[%s3129_s2 + $0x70] sm:$0xff]  ;;  %v120_v25 = vld [vmem:[#allocation6 + $0x18] sm:$0xff]  ;;  %56 = vst.msk [vmem:[#allocation3 + $0x18] sm:$0xff] %vm3162_vm14, %v3132_v55 }
  0x16   :  { %1539 = vmatprep.subr.mxu0 %v130_v3  ;;  %1593 = vmatprep.subr.mxu1 %v130_v3  ;;  %v290_v21 = vld [vmem:[%s3129_s2 + $0x60] sm:$0xff]  ;;  %v119_v26 = vld [vmem:[#allocation6 + $0x10] sm:$0xff]  ;;  %v118_v27 = vld [vmem:[#allocation6 + $0x8] sm:$0xff]  ;;  %57 = vst.msk [vmem:[#allocation3 + $0x20] sm:$0xff] %vm3162_vm14, %v3132_v55 }
  0x17   :  { %v121_v24 = vld [vmem:[#allocation6 + $0x20] sm:$0xff]  ;;  %v102_v29 = vld [vmem:[%s3127_s0 + $0x8] sm:$0xff]  ;;  %v103_v31 = vld [vmem:[%s3127_s0 + $0x10] sm:$0xff]  ;;  %58 = vst.msk [vmem:[#allocation3 + $0x28] sm:$0xff] %vm3162_vm14, %v3132_v55 }
  0x18   :  { %750 = vperm.xlu1 %1631, %v280_v9   ;;  %753 = vperm.xlu0 %1630, %v281_v13   ;;  %v117_v28 = vld [vmem:[#allocation6] sm:$0xff]  ;;  %v110_v30 = vld [vmem:[%s3127_s0 + $0x48] sm:$0xff]  ;;  %v111_v32 = vld [vmem:[%s3127_s0 + $0x50] sm:$0xff]  ;;  %59 = vst.msk [vmem:[#allocation3 + $0x30] sm:$0xff] %vm3162_vm14, %v3132_v55 }
  0x19   :  { %1540 = vmatpush3.xpose.msra.mxu0 %v130_v3  ;;  %1609 = vmatpush3.xpose.msra.mxu1 %v130_v3  ;;  %v104_v33 = vld [vmem:[%s3127_s0 + $0x18] sm:$0xff]  ;;  %v105_v35 = vld [vmem:[%s3127_s0 + $0x20] sm:$0xff]  ;;  %v106_v37 = vld [vmem:[%s3127_s0 + $0x28] sm:$0xff]  ;;  %60 = vst.msk [vmem:[#allocation3 + $0x38] sm:$0xff] %vm3162_vm14, %v3132_v55 }
  0x1a   :  { %1541 = vmatprep.subr.mxu0 %v129_v6  ;;  %1594 = vmatprep.subr.mxu1 %v129_v6  ;;  %v112_v34 = vld [vmem:[%s3127_s0 + $0x58] sm:$0xff]  ;;  %v113_v36 = vld [vmem:[%s3127_s0 + $0x60] sm:$0xff]  ;;  %v114_v38 = vld [vmem:[%s3127_s0 + $0x68] sm:$0xff]  ;;  %61 = vst.msk [vmem:[#allocation3 + $0x40] sm:$0xff] %vm3162_vm14, %v3132_v55 }
  0x1b   :  { %v107_v39 = vld [vmem:[%s3127_s0 + $0x30] sm:$0xff]  ;;  %v108_v41 = vld [vmem:[%s3127_s0 + $0x38] sm:$0xff]  ;;  %v294_v44 = vld [vmem:[%s3130_s3] sm:$0x1]  ;;  %62 = vst.msk [vmem:[#allocation3 + $0x48] sm:$0xff] %vm3162_vm14, %v3132_v55 }
  0x1c   :  { %756 = vperm.xlu1 %1631, %v282_v12   ;;  %v115_v40 = vld [vmem:[%s3127_s0 + $0x70] sm:$0xff]  ;;  %v116_v42 = vld [vmem:[%s3127_s0 + $0x78] sm:$0xff]  ;;  %vm295_vm0 = vcmp.ge.s32.totalorder %v294_v44, 0  ;;  %v1953_v52 = vrot.slane %v294_v44, %v339_v46  ;;  %63 = vst.msk [vmem:[#allocation3 + $0x50] sm:$0xff] %vm3162_vm14, %v3132_v55  ;;  %64 = vst.msk [vmem:[#allocation3 + $0x58] sm:$0xff] %vm3162_vm14, %v3132_v55 }
  0x1d   :  { %1542 = vmatpush3.xpose.msra.mxu0 %v129_v6  ;;  %1610 = vmatpush3.xpose.msra.mxu1 %v129_v6  ;;  %v336_v47 = vsel %vm295_vm0, 1, %v1823_v0  ;;  %65 = vst.msk [vmem:[#allocation3 + $0x60] sm:$0xff] %vm3162_vm14, %v3132_v55  ;;  %66 = vst.msk [vmem:[#allocation3 + $0x68] sm:$0xff] %vm3162_vm14, %v3132_v55  ;;  %v283_v51 = vld [vmem:[%s3129_s2 + $0x28] sm:$0xff] }
  0x1e   :  { %1543 = vmatprep.subr.mxu0 %v128_v8  ;;  %1595 = vmatprep.subr.mxu1 %v128_v8  ;;  %v1945_v48 = vrot.slane %v336_v47, %v339_v46  ;;  %67 = vst.msk [vmem:[#allocation3 + $0x70] sm:$0xff] %vm3162_vm14, %v3132_v55  ;;  %68 = vst.msk [vmem:[#allocation3 + $0x78] sm:$0xff] %vm3162_vm14, %v3132_v55 }
  0x1f   :  { %69 = vst.msk [vmem:[#allocation4] sm:$0xff] %vm3162_vm14, %v3132_v55  ;;  %70 = vst.msk [vmem:[#allocation4 + $0x8] sm:$0xff] %vm3162_vm14, %v3132_v55 }
  0x20   :  { %762 = vperm.xlu1 %1631, %v284_v15   ;;  %vm341_vm1 = vcmp.eq.s32.totalorder %v1945_v48, 1  ;;  %71 = vst.msk [vmem:[#allocation4 + $0x10] sm:$0xff] %vm3162_vm14, %v3132_v55  ;;  %72 = vst.msk [vmem:[#allocation4 + $0x18] sm:$0xff] %vm3162_vm14, %v3132_v55 }
  0x21   :  { %1544 = vmatpush3.xpose.msra.mxu0 %v128_v8  ;;  %1611 = vmatpush3.xpose.msra.mxu1 %v128_v8  ;;  %vm1957_vm3 = vmand %vm341_vm1, %vm321_vm2  ;;  %73 = vst.msk [vmem:[#allocation4 + $0x20] sm:$0xff] %vm3162_vm14, %v3132_v55 }
  0x22   :  { %1545 = vmatprep.subr.mxu0 %v127_v11  ;;  %1596 = vmatprep.subr.mxu1 %v127_v11  ;;  %vm1972_vm8 = vmand %vm341_vm1, %vm322_vm4  ;;  %74 = vst.msk [vmem:[#allocation4 + $0x28] sm:$0xff] %vm3162_vm14, %v3132_v55 }
  0x23   :  { %vm1979_vm9 = vmand %vm341_vm1, %vm320_vm6  ;;  %75 = vst.msk [vmem:[#allocation4 + $0x30] sm:$0xff] %vm3162_vm14, %v3132_v55 }
  0x24   :  { %768 = vperm.xlu1 %1631, %v286_v17   ;;  %76 = vst.msk [vmem:[#allocation4 + $0x38] sm:$0xff] %vm3162_vm14, %v3132_v55  ;;  %77 = vst.msk [vmem:[#allocation4 + $0x40] sm:$0xff] %vm3162_vm14, %v3132_v55 }
  0x25   :  { %1546 = vmatpush3.xpose.msra.mxu0 %v127_v11  ;;  %1612 = vmatpush3.xpose.msra.mxu1 %v127_v11  ;;  %78 = vst.msk [vmem:[#allocation4 + $0x48] sm:$0xff] %vm3162_vm14, %v3132_v55  ;;  %79 = vst.msk [vmem:[#allocation4 + $0x50] sm:$0xff] %vm3162_vm14, %v3132_v55 }
  0x26   :  { %1547 = vmatprep.subr.mxu0 %v126_v14  ;;  %1597 = vmatprep.subr.mxu1 %v126_v14  ;;  %80 = vst.msk [vmem:[#allocation4 + $0x58] sm:$0xff] %vm3162_vm14, %v3132_v55  ;;  %81 = vst.msk [vmem:[#allocation4 + $0x60] sm:$0xff] %vm3162_vm14, %v3132_v55 }
  0x27   :  { %82 = vst.msk [vmem:[#allocation4 + $0x68] sm:$0xff] %vm3162_vm14, %v3132_v55  ;;  %83 = vst.msk [vmem:[#allocation4 + $0x70] sm:$0xff] %vm3162_vm14, %v3132_v55 }
  0x28   :  { %774 = vperm.xlu1 %1631, %v288_v19   ;;  %84 = vst.msk [vmem:[#allocation4 + $0x78] sm:$0xff] %vm3162_vm14, %v3132_v55  ;;  %85 = vst.msk [vmem:[#allocation5] sm:$0xff] %vm3162_vm14, %v3132_v55 }
  0x29   :  { %1548 = vmatpush3.xpose.msra.mxu0 %v126_v14  ;;  %1613 = vmatpush3.xpose.msra.mxu1 %v126_v14  ;;  %87 = vst.msk [vmem:[#allocation5 + $0x10] sm:$0xff] %vm3162_vm14, %v3132_v55  ;;  %88 = vst.msk [vmem:[#allocation5 + $0x18] sm:$0xff] %vm3162_vm14, %v3132_v55 }
  0x2a   :  { %1549 = vmatprep.subr.mxu0 %v125_v16  ;;  %1598 = vmatprep.subr.mxu1 %v125_v16  ;;  %89 = vst.msk [vmem:[#allocation5 + $0x20] sm:$0xff] %vm3162_vm14, %v3132_v55  ;;  %90 = vst.msk [vmem:[#allocation5 + $0x28] sm:$0xff] %vm3162_vm14, %v3132_v55 }
  0x2b   :  { %91 = vst.msk [vmem:[#allocation5 + $0x30] sm:$0xff] %vm3162_vm14, %v3132_v55  ;;  %92 = vst.msk [vmem:[#allocation5 + $0x38] sm:$0xff] %vm3162_vm14, %v3132_v55 }
  0x2c   :  { %780 = vperm.xlu1 %1631, %v290_v21   ;;  %93 = vst.msk [vmem:[#allocation5 + $0x40] sm:$0xff] %vm3162_vm14, %v3132_v55  ;;  %94 = vst.msk [vmem:[#allocation5 + $0x48] sm:$0xff] %vm3162_vm14, %v3132_v55 }
  0x2d   :  { %1550 = vmatpush3.xpose.msra.mxu0 %v125_v16  ;;  %1614 = vmatpush3.xpose.msra.mxu1 %v125_v16  ;;  %95 = vst.msk [vmem:[#allocation5 + $0x50] sm:$0xff] %vm3162_vm14, %v3132_v55  ;;  %96 = vst.msk [vmem:[#allocation5 + $0x58] sm:$0xff] %vm3162_vm14, %v3132_v55 }
  0x2e   :  { %1551 = vmatprep.subr.mxu0 %v124_v18  ;;  %1599 = vmatprep.subr.mxu1 %v124_v18  ;;  %97 = vst.msk [vmem:[#allocation5 + $0x60] sm:$0xff] %vm3162_vm14, %v3132_v55  ;;  %98 = vst.msk [vmem:[#allocation5 + $0x68] sm:$0xff] %vm3162_vm14, %v3132_v55 }
  0x2f   :  { %99 = vst.msk [vmem:[#allocation5 + $0x70] sm:$0xff] %vm3162_vm14, %v3132_v55  ;;  %100 = vst.msk [vmem:[#allocation5 + $0x78] sm:$0xff] %vm3162_vm14, %v3132_v55 }
  0x30   :  { %786 = vperm.xlu1 %1631, %v292_v23   ;;  %46 = vst.msk [vmem:[#allocation2 + $0x48] sm:$0xff] %vm3162_vm14, %v1825_v63  ;;  %37 = vst.msk [vmem:[#allocation2] sm:$0xff] %vm3162_vm14, %v1825_v63 }
  0x31   :  { %1552 = vmatpush3.xpose.msra.mxu0 %v124_v18  ;;  %1615 = vmatpush3.xpose.msra.mxu1 %v124_v18  ;;  %38 = vst.msk [vmem:[#allocation2 + $0x8] sm:$0xff] %vm3162_vm14, %v1825_v63  ;;  %39 = vst.msk [vmem:[#allocation2 + $0x10] sm:$0xff] %vm3162_vm14, %v1825_v63 }
  0x32   :  { %1553 = vmatprep.subr.mxu0 %v123_v20  ;;  %1600 = vmatprep.subr.mxu1 %v123_v20  ;;  %40 = vst.msk [vmem:[#allocation2 + $0x18] sm:$0xff] %vm3162_vm14, %v1825_v63  ;;  %41 = vst.msk [vmem:[#allocation2 + $0x20] sm:$0xff] %vm3162_vm14, %v1825_v63 }
  0x33   :  { %42 = vst.msk [vmem:[#allocation2 + $0x28] sm:$0xff] %vm3162_vm14, %v1825_v63  ;;  %43 = vst.msk [vmem:[#allocation2 + $0x30] sm:$0xff] %vm3162_vm14, %v1825_v63 }
  0x34   :  { %44 = vst.msk [vmem:[#allocation2 + $0x38] sm:$0xff] %vm3162_vm14, %v1825_v63  ;;  %45 = vst.msk [vmem:[#allocation2 + $0x40] sm:$0xff] %vm3162_vm14, %v1825_v63 }
  0x35   :  { %1554 = vmatpush3.xpose.msra.mxu0 %v123_v20  ;;  %1616 = vmatpush3.xpose.msra.mxu1 %v123_v20  ;;  %47 = vst.msk [vmem:[#allocation2 + $0x50] sm:$0xff] %vm3162_vm14, %v1825_v63  ;;  %48 = vst.msk [vmem:[#allocation2 + $0x58] sm:$0xff] %vm3162_vm14, %v1825_v63 }
  0x36   :  { %1555 = vmatprep.subr.mxu0 %v122_v22  ;;  %1601 = vmatprep.subr.mxu1 %v122_v22  ;;  %49 = vst.msk [vmem:[#allocation2 + $0x60] sm:$0xff] %vm3162_vm14, %v1825_v63  ;;  %50 = vst.msk [vmem:[#allocation2 + $0x68] sm:$0xff] %vm3162_vm14, %v1825_v63 }
  0x37   :  { %51 = vst.msk [vmem:[#allocation2 + $0x70] sm:$0xff] %vm3162_vm14, %v1825_v63  ;;  %52 = vst.msk [vmem:[#allocation2 + $0x78] sm:$0xff] %vm3162_vm14, %v1825_v63  ;;  %v291_v63 = vld [vmem:[%s3129_s2 + $0x68] sm:$0xff] }
  0x39   :  { %1556 = vmatpush3.xpose.msra.mxu0 %v122_v22  ;;  %1617 = vmatpush3.xpose.msra.mxu1 %v122_v22 }
  0x3a   :  { %1557 = vmatprep.subr.mxu0 %v121_v24  ;;  %1602 = vmatprep.subr.mxu1 %v121_v24 }
  0x3d   :  { %1558 = vmatpush3.xpose.msra.mxu0 %v121_v24  ;;  %1618 = vmatpush3.xpose.msra.mxu1 %v121_v24 }
  0x3e   :  { %1559 = vmatprep.subr.mxu0 %v120_v25  ;;  %1603 = vmatprep.subr.mxu1 %v120_v25 }
  0x41   :  { %1560 = vmatpush3.xpose.msra.mxu0 %v120_v25  ;;  %1619 = vmatpush3.xpose.msra.mxu1 %v120_v25 }
  0x42   :  { %1561 = vmatprep.subr.mxu0 %v119_v26  ;;  %1604 = vmatprep.subr.mxu1 %v119_v26 }
  0x45   :  { %1562 = vmatpush3.xpose.msra.mxu0 %v119_v26  ;;  %1620 = vmatpush3.xpose.msra.mxu1 %v119_v26 }
  0x46   :  { %1563 = vmatprep.subr.mxu0 %v118_v27  ;;  %1605 = vmatprep.subr.mxu1 %v118_v27 }
  0x49   :  { %1564 = vmatpush3.xpose.msra.mxu0 %v118_v27  ;;  %1621 = vmatpush3.xpose.msra.mxu1 %v118_v27  ;;  %v940_v27 = vld [vmem:[#allocation5 + $0x8] sm:$0xff] }
  0x4a   :  { %1565 = vmatprep.subr.mxu0 %v117_v28  ;;  %1606 = vmatprep.subr.mxu1 %v117_v28 }
  0x4d   :  { %1566 = vmatpush3.xpose.msra.mxu0 %v117_v28  ;;  %1622 = vmatpush3.xpose.msra.mxu1 %v117_v28 }
  0x50   :  { %1568 = vmatmul.mubr.f32.vlgmr.msra.gmra.mxu0 %v102_v29  ;;  %1580 = vmatmul.mubr.f32.vlgmr.msra.gmra.mxu1 %v110_v30 }
  0x51   :  { %1570 = vmatprep.mubr.f32.mxu0 %v103_v31  ;;  %1582 = vmatprep.mubr.f32.mxu1 %v111_v32 }
  0x54   :  { %1571 = vmatmul.mubr.f32.gmra.mxu0 %v104_v33  ;;  %1583 = vmatmul.mubr.f32.gmra.mxu1 %v112_v34 }
  0x55   :  { %1573 = vmatprep.mubr.f32.mxu0 %v105_v35  ;;  %1585 = vmatprep.mubr.f32.mxu1 %v113_v36  ;;  %v941_v35 = vld [vmem:[#allocation5 + $0x10] sm:$0xff] }
  0x58   :  { %1574 = vmatmul.mubr.f32.gmra.mxu0 %v106_v37  ;;  %1586 = vmatmul.mubr.f32.gmra.mxu1 %v114_v38  ;;  %v939_v38 = vld [vmem:[#allocation5] sm:$0xff] }
  0x59   :  { %1576 = vmatprep.mubr.f32.mxu0 %v107_v39  ;;  %1588 = vmatprep.mubr.f32.mxu1 %v115_v40 }
  0x5c   :  { %1577 = vmatmul.mubr.f32.gmra.mxu0 %v108_v41  ;;  %1589 = vmatmul.mubr.f32.gmra.mxu1 %v116_v42 }
  0x8f   :  { %v748_v54 = vpop.permute.xlu1 %747  ;;  %v745_v59 = vpop.permute.xlu0 %744 }
  0x90   :  { %vm796_vm5 = vcmp.eq.s32.totalorder %v748_v54, %v1953_v52  ;;  %vm795_vm11 = vcmp.eq.s32.totalorder %v745_v59, %v1953_v52  ;;  %v285_v54 = vld [vmem:[%s3129_s2 + $0x38] sm:$0xff] }
  0x91   :  { %vm812_vm7 = vmand %vm796_vm5, %vm1957_vm3  ;;  %v289_v59 = vld [vmem:[%s3129_s2 + $0x58] sm:$0xff] }
  0x92   :  { %v1968_v56 = vsel %vm812_vm7, 1.0, %v3132_v55  ;;  %vm811_vm13 = vmand %vm795_vm11, %vm1979_vm9 }
  0x93   :  { %v751_v58 = vpop.permute.xlu1 %750  ;;  %957 = vadd.xlane.f32.xlu0 %v1968_v56  ;;  %v1994_v62 = vsel %vm811_vm13, 1.0, %v3132_v55  ;;  %v2189_v24 = vpop.permute.xlu0 %753 }
  0x94   :  { %vm797_vm10 = vcmp.eq.s32.totalorder %v751_v58, %v1953_v52  ;;  %955 = vadd.xlane.f32.xlu1 %v1994_v62  ;;  %v287_v58 = vld [vmem:[%s3129_s2 + $0x48] sm:$0xff] }
  0x95   :  { %vm813_vm12 = vmand %vm797_vm10, %vm1972_vm8 }
  0x96   :  { %v1988_v61 = vsel %vm813_vm12, 1.0, %v3132_v55 }
  0x97   :  { %959 = vadd.xlane.f32.xlu0 %v1988_v61  ;;  %v2109_v0 = vpop.permute.xlu1 %756 }
  0x98   :  { %vm799_vm0 = vcmp.eq.s32.totalorder %v2109_v0, %v1953_v52  ;;  %v3231_v0 = vmov 0 }
  0x9b   :  { %v2111_v1 = vpop.permute.xlu1 %762 }
  0x9c   :  { %vm801_vm6 = vcmp.eq.s32.totalorder %v2111_v1, %v1953_v52 }
  0x9f   :  { %v2117_v4 = vpop.permute.xlu1 %768 }
  0xa0   :  { %vm803_vm12 = vcmp.eq.s32.totalorder %v2117_v4, %v1953_v52 }
  0xa3   :  { %v2153_v14 = vpop.permute.xlu1 %774 }
  0xa7   :  { %v2176_v20 = vpop.permute.xlu1 %780 }
  0xab   :  { %v2217_v33 = vpop.permute.xlu1 %786 }
 0x110   :  { %v2113_v2 = vpop.f32.mrf.mxu0  ;;  %v2115_v3 = vpop.f32.mrf.mxu1 }
 0x111   :  { %v2122_v5 = vsel %vm341_vm1, %v2115_v3, -1e+30  ;;  %v2127_v6 = vsel %vm341_vm1, %v2113_v2, -1e+30  ;;  %v860_v48 = vmul.f32 %v2113_v2, %v1968_v56 }
 0x112   :  { %408 = vmax.xlane.f32.xlu1 %v2122_v5  ;;  %v2130_v7 = vpop.f32.mrf.mxu1  ;;  %392 = vmax.xlane.f32.xlu0 %v2127_v6  ;;  %v2133_v8 = vpop.f32.mrf.mxu0 }
 0x113   :  { %v2140_v10 = vsel %vm341_vm1, %v2133_v8, -1e+30  ;;  %v2163_v16 = vsel %vm341_vm1, %v2130_v7, -1e+30 }
 0x114   :  { %v2135_v9 = vpop.f32.mrf.mxu0  ;;  %v2147_v12 = vpop.f32.mrf.mxu1 }
 0x115   :  { %v2145_v11 = vsel %vm341_vm1, %v2135_v9, -1e+30  ;;  %v2158_v15 = vsel %vm341_vm1, %v2147_v12, -1e+30 }
 0x116   :  { %390 = vmax.xlane.f32.xlu0 %v2140_v10  ;;  %396 = vmax.xlane.f32.xlu1 %v2145_v11  ;;  %v2151_v13 = vpop.f32.mrf.mxu0  ;;  %v2165_v17 = vpop.f32.mrf.mxu1 }
 0x117   :  { %3193 = vst [vmem:[#allocation12_spill] sm:$0xff] %v2165_v17  ;;  %v2174_v19 = vsel %vm341_vm1, %v2165_v17, -1e+30  ;;  %v2181_v21 = vsel %vm341_vm1, %v2151_v13, -1e+30 }
 0x118   :  { %v2167_v18 = vpop.f32.mrf.mxu0  ;;  %v2183_v22 = vpop.f32.mrf.mxu1 }
 0x119   :  { %v2194_v25 = vsel %vm341_vm1, %v2167_v18, -1e+30  ;;  %v2210_v30 = vsel %vm341_vm1, %v2183_v22, -1e+30 }
 0x11a   :  { %406 = vmax.xlane.f32.xlu0 %v2163_v16  ;;  %412 = vmax.xlane.f32.xlu1 %v2158_v15  ;;  %v2185_v23 = vpop.f32.mrf.mxu0  ;;  %v2201_v28 = vpop.f32.mrf.mxu1 }
 0x11b   :  { %v2199_v26 = vsel %vm341_vm1, %v2185_v23, -1e+30  ;;  %3194 = vst [vmem:[#allocation13_spill] sm:$0xff] %v2201_v28  ;;  %v2215_v31 = vsel %vm341_vm1, %v2201_v28, -1e+30 }
 0x11c   :  { %v2203_v29 = vpop.f32.mrf.mxu0  ;;  %v958_v32 = vpop.xlane.xlu0 %957 }
 0x11d   :  { %v988_v34 = vadd.f32 %v958_v32, %v940_v27  ;;  %v2219_v36 = vpop.f32.mrf.mxu1  ;;  %v2229_v39 = vsel %vm341_vm1, %v2203_v29, -1e+30  ;;  %v956_v43 = vpop.xlane.xlu1 %955  ;;  %v293_v27 = vld [vmem:[%s3129_s2 + $0x78] sm:$0xff]  ;;  %v2272_v32 = vld [vmem:[#allocation2 + $0x48] sm:$0xff] }
 0x11e   :  { %410 = vmax.xlane.f32.xlu0 %v2174_v19  ;;  %394 = vmax.xlane.f32.xlu1 %v2181_v21  ;;  %3195 = vst [vmem:[#allocation14_spill] sm:$0xff] %v2219_v36  ;;  %v2221_v37 = vpop.f32.mrf.mxu0  ;;  %v987_v44 = vadd.f32 %v956_v43, %v939_v38  ;;  %v2244_v47 = vsel %vm341_vm1, %v2219_v36, -1e+30  ;;  %3197 = vst [vmem:[#allocation16_spill] sm:$0xff] %v2272_v32  ;;  %v2282_v43 = vld [vmem:[#allocation2] sm:$0xff] }
 0x11f   :  { %1004 = vst.msk [vmem:[#allocation5 + $0x8] sm:$0xff] %vm3162_vm14, %v988_v34  ;;  %v2234_v40 = vsel %vm341_vm1, %v2221_v37, -1e+30  ;;  %v2236_v46 = vpop.f32.mrf.mxu1  ;;  %v2274_v34 = vld [vmem:[#allocation2 + $0x8] sm:$0xff]  ;;  %3201 = vst [vmem:[#allocation20_spill] sm:$0xff] %v2282_v43 }
 0x120   :  { %v960_v41 = vpop.xlane.xlu0 %959  ;;  %3196 = vst [vmem:[#allocation15_spill] sm:$0xff] %v2236_v46  ;;  %v2249_v49 = vsel %vm341_vm1, %v2236_v46, -1e+30  ;;  %1003 = vst.msk [vmem:[#allocation5] sm:$0xff] %vm3162_vm14, %v987_v44  ;;  %v2284_v44 = vld [vmem:[#allocation2 + $0x18] sm:$0xff] }
 0x121   :  { %v989_v42 = vadd.f32 %v960_v41, %v941_v35  ;;  %3198 = vst [vmem:[#allocation17_spill] sm:$0xff] %v2274_v34  ;;  %3202 = vst [vmem:[#allocation21_spill] sm:$0xff] %v2284_v44 }
 0x122   :  { %400 = vmax.xlane.f32.xlu1 %v2194_v25  ;;  %398 = vmax.xlane.f32.xlu0 %v2199_v26 }
 0x123   :  { %1005 = vst.msk [vmem:[#allocation5 + $0x10] sm:$0xff] %vm3162_vm14, %v989_v42 }
 0x126   :  { %416 = vmax.xlane.f32.xlu1 %v2210_v30  ;;  %414 = vmax.xlane.f32.xlu0 %v2215_v31 }
 0x12a   :  { %404 = vmax.xlane.f32.xlu1 %v2229_v39  ;;  %402 = vmax.xlane.f32.xlu0 %v2234_v40 }
 0x12e   :  { %420 = vmax.xlane.f32.xlu1 %v2244_v47  ;;  %418 = vmax.xlane.f32.xlu0 %v2249_v49 }
 0x144   :  { %759 = vperm.xlu0 %1630, %v283_v51  }
 0x148   :  { %765 = vperm.xlu0 %1630, %v285_v54   ;;  %v2321_v54 = vld [vmem:[#allocation2 + $0x50] sm:$0xff] }
 0x149   :  { %3209 = vst [vmem:[#allocation28_spill] sm:$0xff] %v2321_v54 }
 0x14c   :  { %771 = vperm.xlu0 %1630, %v287_v58  }
 0x150   :  { %777 = vperm.xlu0 %1630, %v289_v59  }
 0x154   :  { %783 = vperm.xlu0 %1630, %v291_v63  }
 0x158   :  { %789 = vperm.xlu0 %1630, %v293_v27  }
 0x19b   :  { %v409_v35 = vpop.xlane.xlu1 %408  ;;  %v393_v38 = vpop.xlane.xlu0 %392 }
 0x19c   :  { %v2277_v41 = vmax.f32 %v2272_v32, %v409_v35  ;;  %v2280_v42 = vmax.f32 %v2274_v34, %v393_v38  ;;  %v2302_v35 = vld [vmem:[#allocation2 + $0x40] sm:$0xff]  ;;  %v2304_v38 = vld [vmem:[#allocation2 + $0x58] sm:$0xff]  ;;  %v2401_v32 = vld [vmem:[#allocation2 + $0x70] sm:$0xff] }
 0x19d   :  { %3205 = vst [vmem:[#allocation24_spill] sm:$0xff] %v2302_v35  ;;  %3206 = vst [vmem:[#allocation25_spill] sm:$0xff] %v2304_v38  ;;  %v2343_v34 = vld [vmem:[#allocation2 + $0x20] sm:$0xff] }
 0x19e   :  { %3199 = vst [vmem:[#allocation18_spill] sm:$0xff] %v2277_v41  ;;  %3200 = vst [vmem:[#allocation19_spill] sm:$0xff] %v2280_v42  ;;  %533 = vperm.xlu0 %1630, %v2277_v41   ;;  %493 = vperm.xlu1 %1631, %v2280_v42  }
 0x19f   :  { %736 = vst.msk [vmem:[#allocation2 + $0x48] sm:$0xff] %vm3162_vm14, %v2277_v41  ;;  %728 = vst.msk [vmem:[#allocation2 + $0x8] sm:$0xff] %vm3162_vm14, %v2280_v42  ;;  %v391_v58 = vpop.xlane.xlu0 %390  ;;  %v397_v59 = vpop.xlane.xlu1 %396 }
 0x1a0   :  { %v2297_v63 = vmax.f32 %v2282_v43, %v391_v58  ;;  %v2300_v27 = vmax.f32 %v2284_v44, %v397_v59  ;;  %v2323_v43 = vld [vmem:[#allocation2 + $0x10] sm:$0xff]  ;;  %3214 = vst [vmem:[#allocation33_spill] sm:$0xff] %v2343_v34  ;;  %v2360_v44 = vld [vmem:[#allocation2 + $0x68] sm:$0xff]  ;;  %3226 = vst [vmem:[#allocation45_spill] sm:$0xff] %v2401_v32 }
 0x1a1   :  { %3210 = vst [vmem:[#allocation29_spill] sm:$0xff] %v2323_v43  ;;  %3217 = vst [vmem:[#allocation36_spill] sm:$0xff] %v2360_v44 }
 0x1a2   :  { %3203 = vst [vmem:[#allocation22_spill] sm:$0xff] %v2297_v63  ;;  %3204 = vst [vmem:[#allocation23_spill] sm:$0xff] %v2300_v27  ;;  %488 = vperm.xlu0 %1630, %v2297_v63  }
 0x1a3   :  { %727 = vst.msk [vmem:[#allocation2] sm:$0xff] %vm3162_vm14, %v2297_v63  ;;  %730 = vst.msk [vmem:[#allocation2 + $0x18] sm:$0xff] %vm3162_vm14, %v2300_v27  ;;  %v407_v58 = vpop.xlane.xlu0 %406  ;;  %v413_v59 = vpop.xlane.xlu1 %412 }
 0x1a4   :  { %v2316_v55 = vmax.f32 %v2302_v35, %v407_v58  ;;  %v2319_v42 = vmax.f32 %v2304_v38, %v413_v59  ;;  %v2341_v35 = vld [vmem:[#allocation2 + $0x28] sm:$0xff] }
 0x1a5   :  { %3213 = vst [vmem:[#allocation32_spill] sm:$0xff] %v2341_v35 }
 0x1a6   :  { %3207 = vst [vmem:[#allocation26_spill] sm:$0xff] %v2316_v55  ;;  %3208 = vst [vmem:[#allocation27_spill] sm:$0xff] %v2319_v42  ;;  %528 = vperm.xlu1 %1631, %v2316_v55   ;;  %543 = vperm.xlu0 %1630, %v2319_v42  }
 0x1a7   :  { %735 = vst.msk [vmem:[#allocation2 + $0x40] sm:$0xff] %vm3162_vm14, %v2316_v55  ;;  %738 = vst.msk [vmem:[#allocation2 + $0x58] sm:$0xff] %vm3162_vm14, %v2319_v42  ;;  %v411_v58 = vpop.xlane.xlu0 %410  ;;  %v395_v59 = vpop.xlane.xlu1 %394  ;;  %v2379_v42 = vld [vmem:[#allocation2 + $0x38] sm:$0xff] }
 0x1a8   :  { %v2336_v63 = vmax.f32 %v2321_v54, %v411_v58  ;;  %v2339_v51 = vmax.f32 %v2323_v43, %v395_v59  ;;  %v2362_v54 = vld [vmem:[#allocation2 + $0x60] sm:$0xff]  ;;  %3221 = vst [vmem:[#allocation40_spill] sm:$0xff] %v2379_v42 }
 0x1a9   :  { %3218 = vst [vmem:[#allocation37_spill] sm:$0xff] %v2362_v54 }
 0x1aa   :  { %3211 = vst [vmem:[#allocation30_spill] sm:$0xff] %v2336_v63  ;;  %3212 = vst [vmem:[#allocation31_spill] sm:$0xff] %v2339_v51  ;;  %503 = vperm.xlu1 %1631, %v2300_v27  }
 0x1ab   :  { %737 = vst.msk [vmem:[#allocation2 + $0x50] sm:$0xff] %vm3162_vm14, %v2336_v63  ;;  %729 = vst.msk [vmem:[#allocation2 + $0x10] sm:$0xff] %vm3162_vm14, %v2339_v51  ;;  %v401_v58 = vpop.xlane.xlu1 %400  ;;  %v399_v59 = vpop.xlane.xlu0 %398 }
 0x1ac   :  { %v2355_v38 = vmax.f32 %v2341_v35, %v401_v58  ;;  %v2358_v55 = vmax.f32 %v2343_v34, %v399_v59  ;;  %v2381_v35 = vld [vmem:[#allocation2 + $0x30] sm:$0xff] }
 0x1ad   :  { %3222 = vst [vmem:[#allocation41_spill] sm:$0xff] %v2381_v35 }
 0x1ae   :  { %3215 = vst [vmem:[#allocation34_spill] sm:$0xff] %v2355_v38  ;;  %3216 = vst [vmem:[#allocation35_spill] sm:$0xff] %v2358_v55  ;;  %498 = vperm.xlu1 %1631, %v2339_v51  }
 0x1af   :  { %732 = vst.msk [vmem:[#allocation2 + $0x28] sm:$0xff] %vm3162_vm14, %v2355_v38  ;;  %731 = vst.msk [vmem:[#allocation2 + $0x20] sm:$0xff] %vm3162_vm14, %v2358_v55  ;;  %v417_v58 = vpop.xlane.xlu1 %416  ;;  %v415_v59 = vpop.xlane.xlu0 %414 }
 0x1b0   :  { %v2374_v27 = vmax.f32 %v2360_v44, %v417_v58  ;;  %v2377_v41 = vmax.f32 %v2362_v54, %v415_v59  ;;  %v2399_v44 = vld [vmem:[#allocation2 + $0x78] sm:$0xff]  ;;  %v3229_v58 = vmov 0 }
 0x1b1   :  { %3225 = vst [vmem:[#allocation44_spill] sm:$0xff] %v2399_v44 }
 0x1b2   :  { %3219 = vst [vmem:[#allocation38_spill] sm:$0xff] %v2374_v27  ;;  %3220 = vst [vmem:[#allocation39_spill] sm:$0xff] %v2377_v41  ;;  %538 = vperm.xlu1 %1631, %v2336_v63   ;;  %553 = vperm.xlu0 %1630, %v2374_v27  }
 0x1b3   :  { %740 = vst.msk [vmem:[#allocation2 + $0x68] sm:$0xff] %vm3162_vm14, %v2374_v27  ;;  %739 = vst.msk [vmem:[#allocation2 + $0x60] sm:$0xff] %vm3162_vm14, %v2377_v41  ;;  %v405_v59 = vpop.xlane.xlu1 %404  ;;  %v403_v43 = vpop.xlane.xlu0 %402  ;;  %v305_v27 = vadd.s32 64, %v1941_v45 }
 0x1b4   :  { %v2394_v34 = vmax.f32 %v2379_v42, %v405_v59  ;;  %v2397_v51 = vmax.f32 %v2381_v35, %v403_v43 }
 0x1b5   :  { %vm328_vm10 = vcmp.ne.s32.totalorder %v305_v27, %v1948_v50  ;;  %v309_v27 = vadd.s32 96, %v1941_v45 }
 0x1b6   :  { %3223 = vst [vmem:[#allocation42_spill] sm:$0xff] %v2394_v34  ;;  %3224 = vst [vmem:[#allocation43_spill] sm:$0xff] %v2397_v51  ;;  %513 = vperm.xlu1 %1631, %v2355_v38   ;;  %v3249_v38 = vmov 0 }
 0x1b7   :  { %734 = vst.msk [vmem:[#allocation2 + $0x38] sm:$0xff] %vm3162_vm14, %v2394_v34  ;;  %733 = vst.msk [vmem:[#allocation2 + $0x30] sm:$0xff] %vm3162_vm14, %v2397_v51  ;;  %v421_v43 = vpop.xlane.xlu1 %420  ;;  %v419_v59 = vpop.xlane.xlu0 %418 }
 0x1b8   :  { %v2413_v54 = vmax.f32 %v2399_v44, %v421_v43  ;;  %v2416_v63 = vmax.f32 %v2401_v32, %v419_v59  ;;  %v301_v43 = vadd.s32 32, %v1941_v45  ;;  %v303_v59 = vadd.s32 48, %v1941_v45  ;;  %vm2467_vm13 = vmand %vm341_vm1, %vm328_vm10 }
 0x1ba   :  { %3227 = vst [vmem:[#allocation46_spill] sm:$0xff] %v2413_v54  ;;  %3228 = vst [vmem:[#allocation47_spill] sm:$0xff] %v2416_v63  ;;  %508 = vperm.xlu1 %1631, %v2358_v55   ;;  %563 = vperm.xlu0 %1630, %v2413_v54   ;;  %vm324_vm15 = vcmp.ne.s32.totalorder %v301_v43, %v1948_v50  ;;  %vm326_vm4 = vcmp.ne.s32.totalorder %v303_v59, %v1948_v50  ;;  %v307_v43 = vadd.s32 80, %v1941_v45 }
 0x1bb   :  { %742 = vst.msk [vmem:[#allocation2 + $0x78] sm:$0xff] %vm3162_vm14, %v2413_v54  ;;  %741 = vst.msk [vmem:[#allocation2 + $0x70] sm:$0xff] %vm3162_vm14, %v2416_v63  ;;  %v3236_v54 = vmov 0 }
 0x1bc   :  { %vm2439_vm2 = vmand %vm341_vm1, %vm324_vm15  ;;  %vm330_vm15 = vcmp.ne.s32.totalorder %v307_v43, %v1948_v50  ;;  %v311_v43 = vadd.s32 112, %v1941_v45 }
 0x1bd   :  { %v3230_v58 = vsel %vm2439_vm2, 4294967295, %v3229_v58  ;;  %vm815_vm5 = vmand %vm799_vm0, %vm2439_vm2 }
 0x1be   :  { %548 = vperm.xlu1 %1631, %v2377_v41   ;;  %vm2451_vm7 = vmand %vm341_vm1, %vm326_vm4  ;;  %vm805_vm4 = vcmp.eq.s32.totalorder %v2153_v14, %v1953_v52  ;;  %v3238_v14 = vmov 0  ;;  %v306_v41 = vadd.s32 72, %v1941_v45 }
 0x1bf   :  { %v3232_v0 = vsel %vm2451_vm7, 4294967295, %v3231_v0  ;;  %vm817_vm11 = vmand %vm801_vm6, %vm2451_vm7  ;;  %v760_v4 = vpop.permute.xlu0 %759  ;;  %vm332_vm6 = vcmp.ne.s32.totalorder %v309_v27, %v1948_v50 }
 0x1c0   :  { %vm819_vm0 = vmand %vm803_vm12, %vm2467_vm13 }
 0x1c1   :  { %vm2500_vm12 = vmand %vm341_vm1, %vm332_vm6  ;;  %vm809_vm6 = vcmp.eq.s32.totalorder %v2217_v33, %v1953_v52  ;;  %v304_v33 = vadd.s32 56, %v1941_v45 }
 0x1c2   :  { %523 = vperm.xlu1 %1631, %v2394_v34   ;;  %v3239_v14 = vsel %vm2500_vm12, 4294967295, %v3238_v14  ;;  %v302_v34 = vadd.s32 40, %v1941_v45 }
 0x1c3   :  { %v766_v27 = vpop.permute.xlu0 %765 }
 0x1c6   :  { %518 = vperm.xlu1 %1631, %v2397_v51   ;;  %v300_v51 = vadd.s32 24, %v1941_v45 }
 0x1c7   :  { %v772_v42 = vpop.permute.xlu0 %771 }
 0x1ca   :  { %558 = vperm.xlu1 %1631, %v2416_v63   ;;  %v3233_v63 = vmov 0.0  }
 0x1cb   :  { %v2458_v59 = vsel %vm815_vm5, 1.0, %v3233_v63  ;;  %v2474_v32 = vsel %vm817_vm11, 1.0, %v3233_v63  ;;  %vm2483_vm5 = vmand %vm341_vm1, %vm330_vm15  ;;  %v2490_v44 = vsel %vm819_vm0, 1.0, %v3233_v63  ;;  %vm807_vm11 = vcmp.eq.s32.totalorder %v2176_v20, %v1953_v52 }
 0x1cc   :  { %v3237_v54 = vsel %vm2483_vm5, 4294967295, %v3236_v54  ;;  %vm821_vm10 = vmand %vm805_vm4, %vm2483_vm5  ;;  %vm334_vm15 = vcmp.ne.s32.totalorder %v311_v43, %v1948_v50  ;;  %vm323_vm0 = vcmp.ne.s32.totalorder %v300_v51, %v1948_v50  ;;  %v3241_v20 = vmov 0 }
 0x1cd   :  { %v2506_v35 = vsel %vm821_vm10, 1.0, %v3233_v63  ;;  %vm823_vm4 = vmand %vm807_vm11, %vm2500_vm12  ;;  %vm798_vm10 = vcmp.eq.s32.totalorder %v2189_v24, %v1953_v52  ;;  %vm325_vm11 = vcmp.ne.s32.totalorder %v302_v34, %v1948_v50  ;;  %v3246_v24 = vmov 0 }
 0x1ce   :  { %3240 = vst [vmem:[#allocation48_spill] sm:$0xff] %v2506_v35  ;;  %vm2517_vm14 = vmand %vm341_vm1, %vm334_vm15  ;;  %v2530_v43 = vsel %vm823_vm4, 1.0, %v3233_v63  ;;  %vm327_vm4 = vcmp.ne.s32.totalorder %v304_v33, %v1948_v50  ;;  %v778_v33 = vpop.permute.xlu0 %777 }
 0x1cf   :  { %v3242_v20 = vsel %vm2517_vm14, 4294967295, %v3241_v20  ;;  %vm2525_vm7 = vmand %vm341_vm1, %vm323_vm0  ;;  %3245 = vst [vmem:[#allocation49_spill] sm:$0xff] %v2530_v43  ;;  %vm800_vm0 = vcmp.eq.s32.totalorder %v760_v4, %v1953_v52  ;;  %v859_v4 = vmul.f32 %v1994_v62, %v2133_v8  ;;  %v861_v62 = vmul.f32 %v1988_v61, %v2151_v13 }
 0x1d0   :  { %vm825_vm15 = vmand %vm809_vm6, %vm2517_vm14  ;;  %v312_v13 = vadd.s32 120, %v1941_v45 }
 0x1d1   :  { %vm814_vm12 = vmand %vm798_vm10, %vm2525_vm7  ;;  %v2547_v34 = vsel %vm825_vm15, 1.0, %v3233_v63  ;;  %vm802_vm10 = vcmp.eq.s32.totalorder %v766_v27, %v1953_v52  ;;  %vm329_vm15 = vcmp.ne.s32.totalorder %v306_v41, %v1948_v50  ;;  %v310_v41 = vadd.s32 104, %v1941_v45 }
 0x1d2   :  { %vm2542_vm2 = vmand %vm341_vm1, %vm325_vm11  ;;  %3248 = vst [vmem:[#allocation50_spill] sm:$0xff] %v2547_v34  ;;  %v830_v55 = vsel %vm814_vm12, 1.0, %v3233_v63 }
 0x1d3   :  { %v3247_v24 = vsel %vm2542_vm2, 4294967295, %v3246_v24  ;;  %vm816_vm6 = vmand %vm800_vm0, %vm2542_vm2  ;;  %vm804_vm0 = vcmp.eq.s32.totalorder %v772_v42, %v1953_v52  ;;  %vm335_vm2 = vcmp.ne.s32.totalorder %v312_v13, %v1948_v50 }
 0x1d4   :  { %vm2560_vm11 = vmand %vm341_vm1, %vm327_vm4  ;;  %v2567_v46 = vsel %vm816_vm6, 1.0, %v3233_v63 }
 0x1d5   :  { %v3250_v38 = vsel %vm2560_vm11, 4294967295, %v3249_v38  ;;  %vm818_vm12 = vmand %vm802_vm10, %vm2560_vm11  ;;  %vm806_vm10 = vcmp.eq.s32.totalorder %v778_v33, %v1953_v52  ;;  %vm333_vm11 = vcmp.ne.s32.totalorder %v310_v41, %v1948_v50 }
 0x1d6   :  { %vm2577_vm4 = vmand %vm341_vm1, %vm329_vm15  ;;  %v2584_v27 = vsel %vm818_vm12, 1.0, %v3233_v63 }
 0x1d7   :  { %vm820_vm6 = vmand %vm804_vm0, %vm2577_vm4 }
 0x1d8   :  { %v2599_v42 = vsel %vm820_vm6, 1.0, %v3233_v63  ;;  %vm2621_vm5 = vmand %vm341_vm1, %vm335_vm2  ;;  %vm3264_vm2 = vnez %v3250_v38  ;;  %v863_v38 = vmul.f32 %v2458_v59, %v2185_v23 }
 0x1d9   :  { %963 = vadd.xlane.f32.xlu0 %v2458_v59  ;;  %v3268_v59 = vld [vmem:[#allocation12_spill] sm:$0xff] }
 0x1dd   :  { %967 = vadd.xlane.f32.xlu0 %v2474_v32 }
 0x1e1   :  { %971 = vadd.xlane.f32.xlu0 %v2490_v44 }
 0x1e5   :  { %975 = vadd.xlane.f32.xlu0 %v2506_v35 }
 0x1e9   :  { %979 = vadd.xlane.f32.xlu0 %v2530_v43 }
 0x1ed   :  { %983 = vadd.xlane.f32.xlu0 %v2547_v34  ;;  %v308_v34 = vadd.s32 88, %v1941_v45 }
 0x1ee   :  { %961 = vadd.xlane.f32.xlu1 %v830_v55 }
 0x1ef   :  { %vm331_vm14 = vcmp.ne.s32.totalorder %v308_v34, %v1948_v50 }
 0x1f0   :  { %vm2592_vm15 = vmand %vm341_vm1, %vm331_vm14 }
 0x1f1   :  { %875 = vadd.xlane.f32.xlu0 %v859_v4  ;;  %v784_v4 = vpop.permute.xlu0 %783  ;;  %vm822_vm12 = vmand %vm806_vm10, %vm2592_vm15 }
 0x1f2   :  { %965 = vadd.xlane.f32.xlu1 %v2567_v46  ;;  %vm808_vm0 = vcmp.eq.s32.totalorder %v784_v4, %v1953_v52  ;;  %vm2607_vm14 = vmand %vm341_vm1, %vm333_vm11  ;;  %v2613_v45 = vsel %vm822_vm12, 1.0, %v3233_v63  ;;  %vm3260_vm1 = vnez %v3237_v54 }
 0x1f3   :  { %vm824_vm6 = vmand %vm808_vm0, %vm2607_vm14  ;;  %v870_v23 = vmul.f32 %v2147_v12, %v2613_v45 }
 0x1f4   :  { %v2626_v41 = vsel %vm824_vm6, 1.0, %v3233_v63 }
 0x1f5   :  { %879 = vadd.xlane.f32.xlu0 %v861_v62  ;;  %v790_v33 = vpop.permute.xlu0 %789  ;;  %v865_v62 = vmul.f32 %v2474_v32, %v2221_v37 }
 0x1f6   :  { %969 = vadd.xlane.f32.xlu1 %v2584_v27  ;;  %vm810_vm10 = vcmp.eq.s32.totalorder %v790_v33, %v1953_v52  ;;  %v862_v52 = vmul.f32 %v2135_v9, %v830_v55 }
 0x1f7   :  { %vm826_vm11 = vmand %vm810_vm10, %vm2621_vm5 }
 0x1f8   :  { %v2632_v50 = vsel %vm826_vm11, 1.0, %v3233_v63 }
 0x1f9   :  { %3259 = vst [vmem:[#allocation51_spill] sm:$0xff] %v2632_v50 }
 0x1fa   :  { %973 = vadd.xlane.f32.xlu1 %v2599_v42 }
 0x1fe   :  { %977 = vadd.xlane.f32.xlu1 %v2613_v45 }
 0x200   :  { %v3271_v12 = vld [vmem:[#allocation51_spill] sm:$0xff] }
 0x202   :  { %981 = vadd.xlane.f32.xlu1 %v2626_v41 }
 0x206   :  { %985 = vadd.xlane.f32.xlu1 %v2632_v50 }
 0x20a   :  { %877 = vadd.xlane.f32.xlu1 %v860_v48 }
 0x20e   :  { %881 = vadd.xlane.f32.xlu1 %v862_v52 }
 0x219   :  { %v534_v4 = vpop.permute.xlu0 %533  ;;  %v494_v13 = vpop.permute.xlu1 %493 }
 0x21a   :  { %v575_v33 = vsub.f32 %v2122_v5, %v534_v4  ;;  %v567_v43 = vsub.f32 %v2127_v6, %v494_v13 }
 0x21c   :  { %v600_v28 = vmul.f32 1.442695, %v575_v33  ;;  %v584_v36 = vmul.f32 1.442695, %v567_v43 }
 0x21d   :  { %v489_v35 = vpop.permute.xlu0 %488 }
 0x21e   :  { %1632 = vpow2.f32 %v600_v28  ;;  %v566_v63 = vsub.f32 %v2140_v10, %v489_v35 }
 0x21f   :  { %1634 = vpow2.f32 %v584_v36 }
 0x220   :  { %v582_v50 = vmul.f32 1.442695, %v566_v63 }
 0x221   :  { %v529_v17 = vpop.permute.xlu1 %528  ;;  %v544_v56 = vpop.permute.xlu0 %543 }
 0x222   :  { %1636 = vpow2.f32 %v582_v50  ;;  %v574_v55 = vsub.f32 %v2163_v16, %v529_v17  ;;  %v577_v9 = vsub.f32 %v2158_v15, %v544_v56 }
 0x224   :  { %v598_v2 = vmul.f32 1.442695, %v574_v55  ;;  %v604_v6 = vmul.f32 1.442695, %v577_v9 }
 0x225   :  { %v504_v48 = vpop.permute.xlu1 %503 }
 0x226   :  { %1638 = vpow2.f32 %v598_v2  ;;  %v569_v5 = vsub.f32 %v2145_v11, %v504_v48 }
 0x228   :  { %v588_v43 = vmul.f32 1.442695, %v569_v5 }
 0x229   :  { %v499_v52 = vpop.permute.xlu1 %498 }
 0x22a   :  { %1640 = vpow2.f32 %v588_v43  ;;  %v568_v10 = vsub.f32 %v2181_v21, %v499_v52 }
 0x22b   :  { %v1633_v28 = vpop.eup %1632  ;;  %1642 = vpow2.f32 %v604_v6 }
 0x22c   :  { %v1635_v36 = vpop.eup %1634  ;;  %v586_v63 = vmul.f32 1.442695, %v568_v10  ;;  %v623_v16 = vsel %vm2577_vm4, %v1633_v28, 0.0 }
 0x22d   :  { %680 = vadd.xlane.f32.xlu1 %v623_v16  ;;  %v539_v17 = vpop.permute.xlu1 %538  ;;  %v615_v15 = vsel %vm1957_vm3, %v1635_v36, 0.0  ;;  %v554_v35 = vpop.permute.xlu0 %553  ;;  %vm3261_vm3 = vnez %v3247_v24 }
 0x22e   :  { %1644 = vpow2.f32 %v586_v63  ;;  %v576_v11 = vsub.f32 %v2174_v19, %v539_v17  ;;  %664 = vadd.xlane.f32.xlu0 %v615_v15  ;;  %v579_v21 = vsub.f32 %v2210_v30, %v554_v35 }
 0x22f   :  { %v1637_v50 = vpop.eup %1636 }
 0x230   :  { %v602_v4 = vmul.f32 1.442695, %v576_v11  ;;  %v614_v13 = vsel %vm1979_vm9, %v1637_v50, 0.0  ;;  %v608_v53 = vmul.f32 1.442695, %v579_v21  ;;  %vm3263_vm9 = vnez %v3239_v14 }
 0x231   :  { %v514_v33 = vpop.permute.xlu1 %513  ;;  %662 = vadd.xlane.f32.xlu1 %v614_v13  ;;  %v864_v14 = vmul.f32 %v2167_v18, %v2567_v46  ;;  %v943_v18 = vld [vmem:[#allocation5 + $0x20] sm:$0xff] }
 0x232   :  { %1646 = vpow2.f32 %v602_v4  ;;  %v571_v8 = vsub.f32 %v2194_v25, %v514_v33 }
 0x233   :  { %v1639_v56 = vpop.eup %1638 }
 0x234   :  { %v592_v55 = vmul.f32 1.442695, %v571_v8  ;;  %v622_v2 = vsel %vm2467_vm13, %v1639_v56, 0.0  ;;  %vm3266_vm13 = vnez %v3242_v20 }
 0x235   :  { %v509_v19 = vpop.permute.xlu1 %508  ;;  %678 = vadd.xlane.f32.xlu0 %v622_v2  ;;  %v564_v6 = vpop.permute.xlu0 %563  ;;  %v868_v2 = vmul.f32 %v2115_v3, %v2599_v42  ;;  %v872_v3 = vmul.f32 %v2183_v22, %v2626_v41  ;;  %v3276_v41 = vld [vmem:[#allocation15_spill] sm:$0xff] }
 0x236   :  { %1648 = vpow2.f32 %v592_v55  ;;  %v570_v9 = vsub.f32 %v2199_v26, %v509_v19  ;;  %v581_v52 = vsub.f32 %v2244_v47, %v564_v6  ;;  %v867_v19 = vmul.f32 %v2490_v44, %v2130_v7  ;;  %v3272_v44 = vld [vmem:[#allocation14_spill] sm:$0xff] }
 0x237   :  { %v1641_v30 = vpop.eup %1640  ;;  %1650 = vpow2.f32 %v608_v53  ;;  %v874_v45 = vmul.f32 %v3272_v44, %v3271_v12  ;;  %v949_v6 = vld [vmem:[#allocation5 + $0x50] sm:$0xff]  ;;  %v3301_v12 = vld [vmem:[#allocation24_spill] sm:$0xff] }
 0x238   :  { %v590_v60 = vmul.f32 1.442695, %v570_v9  ;;  %v617_v48 = vsel %vm2525_vm7, %v1641_v30, 0.0  ;;  %v1643_v5 = vpop.eup %1642  ;;  %v612_v16 = vmul.f32 1.442695, %v581_v52  ;;  %vm3265_vm7 = vnez %v3232_v0  ;;  %v947_v9 = vld [vmem:[#allocation5 + $0x40] sm:$0xff] }
 0x239   :  { %v549_v25 = vpop.permute.xlu1 %548  ;;  %668 = vadd.xlane.f32.xlu1 %v617_v48  ;;  %v625_v28 = vsel %vm2592_vm15, %v1643_v5, 0.0  ;;  %v866_v0 = vmul.f32 %v2203_v29, %v2584_v27  ;;  %v945_v29 = vld [vmem:[#allocation5 + $0x30] sm:$0xff]  ;;  %v3269_v27 = vld [vmem:[#allocation48_spill] sm:$0xff]  ;;  %v3274_v48 = vld [vmem:[#allocation49_spill] sm:$0xff] }
 0x23a   :  { %1652 = vpow2.f32 %v590_v60  ;;  %v578_v43 = vsub.f32 %v2215_v31, %v549_v25  ;;  %v869_v42 = vmul.f32 %v3269_v27, %v3268_v59  ;;  %v3273_v60 = vld [vmem:[#allocation13_spill] sm:$0xff]  ;;  %v3277_v25 = vld [vmem:[#allocation50_spill] sm:$0xff]  ;;  %v951_v52 = vld [vmem:[#allocation5 + $0x60] sm:$0xff] }
 0x23b   :  { %v1645_v1 = vpop.eup %1644  ;;  %v871_v5 = vmul.f32 %v3274_v48, %v3273_v60  ;;  %v3298_v27 = vld [vmem:[#allocation20_spill] sm:$0xff]  ;;  %v3302_v44 = vld [vmem:[#allocation26_spill] sm:$0xff]  ;;  %v3304_v60 = vld [vmem:[#allocation21_spill] sm:$0xff] }
 0x23c   :  { %v606_v10 = vmul.f32 1.442695, %v578_v43  ;;  %v616_v26 = vsel %vm1972_vm8, %v1645_v1, 0.0  ;;  %vm3262_vm8 = vnez %v3230_v58  ;;  %v873_v43 = vmul.f32 %v3277_v25, %v3276_v41  ;;  %v3305_v48 = vld [vmem:[#allocation23_spill] sm:$0xff] }
 0x23d   :  { %v524_v36 = vpop.permute.xlu1 %523  ;;  %666 = vadd.xlane.f32.xlu0 %v616_v26  ;;  %684 = vadd.xlane.f32.xlu1 %v625_v28  ;;  %v953_v28 = vld [vmem:[#allocation5 + $0x70] sm:$0xff]  ;;  %v3308_v41 = vld [vmem:[#allocation27_spill] sm:$0xff] }
 0x23e   :  { %1654 = vpow2.f32 %v606_v10  ;;  %v573_v51 = vsub.f32 %v2229_v39, %v524_v36  ;;  %v942_v36 = vld [vmem:[#allocation5 + $0x18] sm:$0xff] }
 0x23f   :  { %v1647_v63 = vpop.eup %1646 }
 0x240   :  { %v596_v17 = vmul.f32 1.442695, %v573_v51  ;;  %v624_v31 = vsel %vm3260_vm1, %v1647_v63, 0.0 }
 0x241   :  { %v519_v47 = vpop.permute.xlu1 %518  ;;  %682 = vadd.xlane.f32.xlu0 %v624_v31  ;;  %v843_v31 = vld [vmem:[#allocation4] sm:$0xff] }
 0x242   :  { %1656 = vpow2.f32 %v596_v17  ;;  %v572_v57 = vsub.f32 %v2234_v40, %v519_v47  ;;  %v944_v47 = vld [vmem:[#allocation5 + $0x28] sm:$0xff] }
 0x243   :  { %v1649_v15 = vpop.eup %1648  ;;  %1658 = vpow2.f32 %v612_v16 }
 0x244   :  { %v594_v61 = vmul.f32 1.442695, %v572_v57  ;;  %v619_v35 = vsel %vm3261_vm3, %v1649_v15, 0.0  ;;  %v1651_v11 = vpop.eup %1650 }
 0x245   :  { %v559_v50 = vpop.permute.xlu1 %558  ;;  %672 = vadd.xlane.f32.xlu1 %v619_v35  ;;  %v627_v40 = vsel %vm2607_vm14, %v1651_v11, 0.0  ;;  %v845_v11 = vld [vmem:[#allocation4 + $0x10] sm:$0xff] }
 0x246   :  { %1660 = vpow2.f32 %v594_v61  ;;  %v580_v39 = vsub.f32 %v2249_v49, %v559_v50  ;;  %v946_v50 = vld [vmem:[#allocation5 + $0x38] sm:$0xff] }
 0x247   :  { %v1653_v4 = vpop.eup %1652 }
 0x248   :  { %v610_v54 = vmul.f32 1.442695, %v580_v39  ;;  %v618_v21 = vsel %vm3262_vm8, %v1653_v4, 0.0 }
 0x249   :  { %670 = vadd.xlane.f32.xlu0 %v618_v21  ;;  %688 = vadd.xlane.f32.xlu1 %v627_v40  ;;  %v948_v40 = vld [vmem:[#allocation5 + $0x48] sm:$0xff] }
 0x24a   :  { %1662 = vpow2.f32 %v610_v54 }
 0x24b   :  { %v1655_v13 = vpop.eup %1654 }
 0x24c   :  { %v626_v24 = vsel %vm3263_vm9, %v1655_v13, 0.0 }
 0x24d   :  { %686 = vadd.xlane.f32.xlu0 %v626_v24 }
 0x24f   :  { %v1657_v33 = vpop.eup %1656 }
 0x250   :  { %v621_v49 = vsel %vm3264_vm2, %v1657_v33, 0.0  ;;  %v1659_v8 = vpop.eup %1658  ;;  %v950_v33 = vld [vmem:[#allocation5 + $0x58] sm:$0xff] }
 0x251   :  { %676 = vadd.xlane.f32.xlu1 %v621_v49  ;;  %v629_v34 = vsel %vm2621_vm5, %v1659_v8, 0.0  ;;  %vm3267_vm5 = vcmask 7168  }
 0x252   :  { %vm3270_vm4 = vmmov %vm3267_vm5 }
 0x253   :  { %v1661_v56 = vpop.eup %1660  ;;  %vm3275_vm15 = vmmov %vm3270_vm4 }
 0x254   :  { %v620_v58 = vsel %vm3265_vm7, %v1661_v56, 0.0  ;;  %vm3278_vm12 = vmmov %vm3270_vm4  ;;  %v952_v56 = vld [vmem:[#allocation5 + $0x68] sm:$0xff] }
 0x255   :  { %674 = vadd.xlane.f32.xlu0 %v620_v58  ;;  %692 = vadd.xlane.f32.xlu1 %v629_v34  ;;  %vm3279_vm0 = vmmov %vm3270_vm4 }
 0x256   :  { %vm3280_vm14 = vmmov %vm3279_vm0 }
 0x257   :  { %v1663_v53 = vpop.eup %1662  ;;  %vm3281_vm6 = vmmov %vm3279_vm0 }
 0x258   :  { %v628_v55 = vsel %vm3266_vm13, %v1663_v53, 0.0  ;;  %vm3282_vm10 = vmmov %vm3279_vm0  ;;  %v954_v53 = vld [vmem:[#allocation5 + $0x78] sm:$0xff] }
 0x259   :  { %690 = vadd.xlane.f32.xlu0 %v628_v55  ;;  %885 = vadd.xlane.f32.xlu1 %v864_v14  ;;  %vm3283_vm11 = vmmov %vm3279_vm0 }
 0x25a   :  { %vm3284_vm1 = vmmov %vm3279_vm0 }
 0x25b   :  { %vm3285_vm3 = vmmov %vm3279_vm0 }
 0x25c   :  { %vm3286_vm8 = vmmov %vm3279_vm0 }
 0x25d   :  { %883 = vadd.xlane.f32.xlu0 %v863_v38  ;;  %889 = vadd.xlane.f32.xlu1 %v866_v0  ;;  %vm3287_vm9 = vmmov %vm3279_vm0  ;;  %v844_v38 = vld [vmem:[#allocation4 + $0x8] sm:$0xff] }
 0x25e   :  { %vm3288_vm2 = vmmov %vm3279_vm0 }
 0x25f   :  { %vm3289_vm7 = vmmov %vm3279_vm0 }
 0x260   :  { %vm3290_vm13 = vmmov %vm3279_vm0 }
 0x261   :  { %887 = vadd.xlane.f32.xlu0 %v865_v62  ;;  %893 = vadd.xlane.f32.xlu1 %v868_v2  ;;  %v846_v2 = vld [vmem:[#allocation4 + $0x18] sm:$0xff] }
 0x262   :  { %v964_v46 = vpop.xlane.xlu0 %963 }
 0x263   :  { %v991_v20 = vadd.f32 %v964_v46, %v943_v18 }
 0x265   :  { %1007 = vst.msk [vmem:[#allocation5 + $0x20] sm:$0xff] %vm3267_vm5, %v991_v20  ;;  %891 = vadd.xlane.f32.xlu0 %v867_v19  ;;  %897 = vadd.xlane.f32.xlu1 %v870_v23  ;;  %vm3291_vm5 = vmmov %vm3279_vm0  ;;  %v3292_v20 = vld [vmem:[#allocation16_spill] sm:$0xff]  ;;  %v3293_v19 = vld [vmem:[#allocation18_spill] sm:$0xff] }
 0x266   :  { %v968_v37 = vpop.xlane.xlu0 %967  ;;  %v3294_v23 = vsub.f32 %v3292_v20, %v3293_v19  ;;  %v633_v20 = vld [vmem:[#allocation3 + $0x18] sm:$0xff] }
 0x267   :  { %v993_v32 = vadd.f32 %v968_v37, %v945_v29  ;;  %v3295_v37 = vld [vmem:[#allocation17_spill] sm:$0xff] }
 0x268   :  { %v472_v29 = vmul.f32 1.442695, %v3294_v23 }
 0x269   :  { %1009 = vst.msk [vmem:[#allocation5 + $0x30] sm:$0xff] %vm3270_vm4, %v993_v32  ;;  %895 = vadd.xlane.f32.xlu0 %v869_v42  ;;  %901 = vadd.xlane.f32.xlu1 %v872_v3  ;;  %v3296_v3 = vld [vmem:[#allocation19_spill] sm:$0xff]  ;;  %v3299_v42 = vld [vmem:[#allocation22_spill] sm:$0xff]  ;;  %vm3319_vm4 = vmmov %vm3279_vm0 }
 0x26a   :  { %v972_v7 = vpop.xlane.xlu0 %971  ;;  %v3297_v32 = vsub.f32 %v3295_v37, %v3296_v3  ;;  %1664 = vpow2.f32 %v472_v29  ;;  %v3328_v29 = vld [vmem:[#allocation37_spill] sm:$0xff]  ;;  %v3329_v37 = vld [vmem:[#allocation39_spill] sm:$0xff] }
 0x26b   :  { %v995_v30 = vadd.f32 %v972_v7, %v947_v9  ;;  %v3300_v9 = vsub.f32 %v3298_v27, %v3299_v42  ;;  %v3330_v3 = vsub.f32 %v3328_v29, %v3329_v37 }
 0x26c   :  { %v456_v59 = vmul.f32 1.442695, %v3297_v32 }
 0x26d   :  { %1011 = vst.msk [vmem:[#allocation5 + $0x40] sm:$0xff] %vm3275_vm15, %v995_v30  ;;  %899 = vadd.xlane.f32.xlu0 %v871_v5  ;;  %905 = vadd.xlane.f32.xlu1 %v874_v45  ;;  %v454_v7 = vmul.f32 1.442695, %v3300_v9  ;;  %v3303_v45 = vsub.f32 %v3301_v12, %v3302_v44  ;;  %v3306_v5 = vsub.f32 %v3304_v60, %v3305_v48  ;;  %vm3320_vm15 = vmmov %vm3279_vm0  ;;  %v478_v32 = vmul.f32 1.442695, %v3330_v3  ;;  %v632_v12 = vld [vmem:[#allocation3 + $0x10] sm:$0xff] }
 0x26e   :  { %v976_v22 = vpop.xlane.xlu0 %975  ;;  %1666 = vpow2.f32 %v456_v59  ;;  %v3331_v60 = vld [vmem:[#allocation40_spill] sm:$0xff]  ;;  %v3332_v48 = vld [vmem:[#allocation42_spill] sm:$0xff]  ;;  %v643_v3 = vld [vmem:[#allocation3 + $0x68] sm:$0xff] }
 0x26f   :  { %v997_v1 = vadd.f32 %v976_v22, %v949_v6  ;;  %1668 = vpow2.f32 %v454_v7  ;;  %v470_v30 = vmul.f32 1.442695, %v3303_v45  ;;  %v460_v6 = vmul.f32 1.442695, %v3306_v5  ;;  %v3307_v22 = vld [vmem:[#allocation25_spill] sm:$0xff]  ;;  %v641_v7 = vld [vmem:[#allocation3 + $0x58] sm:$0xff] }
 0x270   :  { %v3309_v25 = vsub.f32 %v3307_v22, %v3308_v41  ;;  %v3333_v5 = vsub.f32 %v3331_v60, %v3332_v48  ;;  %v642_v60 = vld [vmem:[#allocation3 + $0x60] sm:$0xff] }
 0x271   :  { %1013 = vst.msk [vmem:[#allocation5 + $0x50] sm:$0xff] %vm3278_vm12, %v997_v1  ;;  %903 = vadd.xlane.f32.xlu0 %v873_v43  ;;  %1670 = vpow2.f32 %v470_v30  ;;  %v3310_v1 = vld [vmem:[#allocation29_spill] sm:$0xff]  ;;  %vm3327_vm12 = vmmov %vm3279_vm0 }
 0x272   :  { %v980_v10 = vpop.xlane.xlu0 %979  ;;  %v476_v43 = vmul.f32 1.442695, %v3309_v25  ;;  %1672 = vpow2.f32 %v460_v6  ;;  %v2767_v30 = vld [vmem:[#allocation5 + $0x8] sm:$0xff]  ;;  %v468_v6 = vmul.f32 1.442695, %v3333_v5 }
 0x273   :  { %v999_v26 = vadd.f32 %v980_v10, %v951_v52  ;;  %v3311_v52 = vld [vmem:[#allocation31_spill] sm:$0xff] }
 0x274   :  { %v3312_v10 = vsub.f32 %v3310_v1, %v3311_v52  ;;  %1674 = vpow2.f32 %v476_v43  ;;  %v1760_v43 = vld [vmem:[%s3129_s2 + $0x8] sm:$0xff]  ;;  %v3336_v52 = vld [vmem:[#allocation43_spill] sm:$0xff] }
 0x275   :  { %1015 = vst.msk [vmem:[#allocation5 + $0x60] sm:$0xff] %vm3279_vm0, %v999_v26  ;;  %v3335_v1 = vld [vmem:[#allocation41_spill] sm:$0xff] }
 0x276   :  { %v984_v51 = vpop.xlane.xlu0 %983  ;;  %v458_v26 = vmul.f32 1.442695, %v3312_v10  ;;  %v3337_v10 = vsub.f32 %v3335_v1, %v3336_v52 }
 0x277   :  { %v1001_v63 = vadd.f32 %v984_v51, %v953_v28  ;;  %v962_v16 = vpop.xlane.xlu1 %961  ;;  %v1665_v28 = vpop.eup %1664 }
 0x278   :  { %v990_v17 = vadd.f32 %v962_v16, %v942_v36  ;;  %v639_v36 = vld [vmem:[#allocation3 + $0x48] sm:$0xff]  ;;  %v3313_v16 = vld [vmem:[#allocation28_spill] sm:$0xff]  ;;  %1676 = vpow2.f32 %v458_v26  ;;  %v466_v26 = vmul.f32 1.442695, %v3337_v10 }
 0x279   :  { %1017 = vst.msk [vmem:[#allocation5 + $0x70] sm:$0xff] %vm3280_vm14, %v1001_v63  ;;  %v631_v63 = vld [vmem:[#allocation3 + $0x8] sm:$0xff]  ;;  %vm3334_vm14 = vmmov %vm3279_vm0 }
 0x27a   :  { %1006 = vst.msk [vmem:[#allocation5 + $0x18] sm:$0xff] %vm3281_vm6, %v990_v17  ;;  %v876_v57 = vpop.xlane.xlu0 %875  ;;  %v3314_v17 = vld [vmem:[#allocation30_spill] sm:$0xff]  ;;  %vm1279_vm6 = vcmp.ge.s32.totalorder %v1760_v43, 0 }
 0x27b   :  { %v907_v15 = vadd.f32 %v876_v57, %v843_v31  ;;  %v966_v61 = vpop.xlane.xlu1 %965  ;;  %v1667_v51 = vpop.eup %1666  ;;  %v3315_v31 = vsub.f32 %v3313_v16, %v3314_v17  ;;  %v655_v57 = vmul.f32 %v1665_v28, %v639_v36  ;;  %v1761_v16 = vld [vmem:[%s3129_s2 + $0x10] sm:$0xff]  ;;  %v3338_v17 = vld [vmem:[#allocation44_spill] sm:$0xff] }
 0x27c   :  { %v992_v35 = vadd.f32 %v966_v61, %v944_v47 }
 0x27d   :  { %923 = vst.msk [vmem:[#allocation4] sm:$0xff] %vm3282_vm10, %v907_v15  ;;  %v474_v47 = vmul.f32 1.442695, %v3315_v31  ;;  %v1669_v15 = vpop.eup %1668  ;;  %vm1199_vm10 = vcmp.eq.f32.partialorder %v2767_v30, 0.0  ;;  %v3339_v31 = vld [vmem:[#allocation46_spill] sm:$0xff] }
 0x27e   :  { %1008 = vst.msk [vmem:[#allocation5 + $0x28] sm:$0xff] %vm3283_vm11, %v992_v35  ;;  %v880_v39 = vpop.xlane.xlu0 %879  ;;  %v647_v35 = vmul.f32 %v1667_v51, %v631_v63  ;;  %v640_v51 = vld [vmem:[#allocation3 + $0x50] sm:$0xff]  ;;  %vm1280_vm11 = vcmp.ge.s32.totalorder %v1761_v16, 0 }
 0x27f   :  { %v909_v4 = vadd.f32 %v880_v39, %v845_v11  ;;  %v970_v54 = vpop.xlane.xlu1 %969  ;;  %v630_v11 = vld [vmem:[#allocation3] sm:$0xff]  ;;  %1678 = vpow2.f32 %v474_v47  ;;  %v3340_v47 = vsub.f32 %v3338_v17, %v3339_v31 }
 0x280   :  { %v994_v21 = vadd.f32 %v970_v54, %v946_v50  ;;  %v3316_v54 = vld [vmem:[#allocation32_spill] sm:$0xff] }
 0x281   :  { %925 = vst.msk [vmem:[#allocation4 + $0x10] sm:$0xff] %vm3284_vm1, %v909_v4 }
 0x282   :  { %1010 = vst.msk [vmem:[#allocation5 + $0x38] sm:$0xff] %vm3285_vm3, %v994_v21  ;;  %v3317_v21 = vld [vmem:[#allocation34_spill] sm:$0xff] }
 0x283   :  { %v974_v13 = vpop.xlane.xlu1 %973 }
 0x284   :  { %v996_v24 = vadd.f32 %v974_v13, %v948_v40  ;;  %v3318_v40 = vsub.f32 %v3316_v54, %v3317_v21 }
 0x286   :  { %1012 = vst.msk [vmem:[#allocation5 + $0x48] sm:$0xff] %vm3286_vm8, %v996_v24  ;;  %v464_v13 = vmul.f32 1.442695, %v3318_v40  ;;  %v646_v24 = vmul.f32 %v1669_v15, %v630_v11  ;;  %v1763_v11 = vld [vmem:[%s3129_s2] sm:$0xff]  ;;  %vm3341_vm8 = vmmov %vm3279_vm0  ;;  %v3343_v40 = vmov 0.0  }
 0x287   :  { %v978_v49 = vpop.xlane.xlu1 %977  ;;  %vm1278_vm3 = vcmp.ge.s32.totalorder %v1763_v11, 0  ;;  %v1059_v11 = vld [vmem:[#allocation2 + $0x28] sm:$0xff] }
 0x288   :  { %v998_v8 = vadd.f32 %v978_v49, %v950_v33  ;;  %v1671_v33 = vpop.eup %1670  ;;  %1680 = vpow2.f32 %v464_v13  ;;  %v2801_v13 = vsel %vm1279_vm6, 1.0, %v3343_v40 }
 0x28a   :  { %1014 = vst.msk [vmem:[#allocation5 + $0x58] sm:$0xff] %vm3287_vm9, %v998_v8  ;;  %v638_v8 = vld [vmem:[#allocation3 + $0x40] sm:$0xff]  ;;  %vm3342_vm9 = vmmov %vm3279_vm0 }
 0x28b   :  { %v982_v58 = vpop.xlane.xlu1 %981 }
 0x28c   :  { %v1000_v34 = vadd.f32 %v982_v58, %v952_v56  ;;  %v3321_v58 = vld [vmem:[#allocation33_spill] sm:$0xff] }
 0x28e   :  { %1016 = vst.msk [vmem:[#allocation5 + $0x68] sm:$0xff] %vm3288_vm2, %v1000_v34  ;;  %v3322_v34 = vld [vmem:[#allocation35_spill] sm:$0xff] }
 0x28f   :  { %v986_v14 = vpop.xlane.xlu1 %985 }
 0x290   :  { %v1002_v55 = vadd.f32 %v986_v14, %v954_v53  ;;  %v3323_v53 = vsub.f32 %v3321_v58, %v3322_v34 }
 0x292   :  { %1018 = vst.msk [vmem:[#allocation5 + $0x78] sm:$0xff] %vm3289_vm7, %v1002_v55  ;;  %v462_v14 = vmul.f32 1.442695, %v3323_v53  ;;  %v3324_v55 = vld [vmem:[#allocation36_spill] sm:$0xff]  ;;  %v2819_v53 = vsel %vm1278_vm3, 1.0, %v3343_v40 }
 0x293   :  { %v878_v0 = vpop.xlane.xlu1 %877 }
 0x294   :  { %v908_v62 = vadd.f32 %v878_v0, %v844_v38  ;;  %v3325_v38 = vld [vmem:[#allocation38_spill] sm:$0xff]  ;;  %1682 = vpow2.f32 %v462_v14  ;;  %v3344_v14 = vld [vmem:[#allocation45_spill] sm:$0xff] }
 0x295   :  { %v3326_v0 = vsub.f32 %v3324_v55, %v3325_v38  ;;  %v3345_v55 = vld [vmem:[#allocation47_spill] sm:$0xff] }
 0x296   :  { %924 = vst.msk [vmem:[#allocation4 + $0x8] sm:$0xff] %vm3290_vm13, %v908_v62  ;;  %v3346_v38 = vsub.f32 %v3344_v14, %v3345_v55  ;;  %vm3348_vm13 = vmmov %vm3279_vm0  ;;  %v2859_v14 = vld [vmem:[#allocation5 + $0x40] sm:$0xff] }
 0x297   :  { %v882_v18 = vpop.xlane.xlu1 %881  ;;  %v480_v62 = vmul.f32 1.442695, %v3326_v0  ;;  %vm1206_vm6 = vcmp.eq.f32.partialorder %v2859_v14, 0.0 }
 0x298   :  { %v910_v46 = vadd.f32 %v882_v18, %v846_v2  ;;  %v654_v2 = vmul.f32 %v1671_v33, %v638_v8  ;;  %v1673_v18 = vpop.eup %1672  ;;  %v1764_v33 = vld [vmem:[%s3129_s2 + $0x18] sm:$0xff]  ;;  %v635_v8 = vld [vmem:[#allocation3 + $0x28] sm:$0xff]  ;;  %v482_v0 = vmul.f32 1.442695, %v3346_v38 }
 0x299   :  { %v1675_v23 = vpop.eup %1674  ;;  %1684 = vpow2.f32 %v480_v62  ;;  %v649_v59 = vmul.f32 %v1673_v18, %v633_v20  ;;  %vm1281_vm2 = vcmp.ge.s32.totalorder %v1764_v33, 0  ;;  %v1055_v62 = vld [vmem:[#allocation2 + $0x8] sm:$0xff]  ;;  %v1066_v33 = vld [vmem:[#allocation2 + $0x60] sm:$0xff] }
 0x29a   :  { %926 = vst.msk [vmem:[#allocation4 + $0x18] sm:$0xff] %vm3291_vm5, %v910_v46  ;;  %v1677_v42 = vpop.eup %1676  ;;  %v657_v22 = vmul.f32 %v1675_v23, %v641_v7  ;;  %v2826_v20 = vsel %vm1281_vm2, 1.0, %v3343_v40  ;;  %v1054_v23 = vld [vmem:[#allocation2] sm:$0xff]  ;;  %v1472_v7 = vadd.f32 -1e-12, %v1055_v62  ;;  %vm3355_vm2 = vmmov %vm3279_vm0 }
 0x29b   :  { %v648_v41 = vmul.f32 %v1677_v42, %v632_v12  ;;  %v1679_v25 = vpop.eup %1678  ;;  %3347 = vst [vmem:[#allocation12_spill] sm:$0xff] %v2826_v20  ;;  %v2837_v48 = vadd.f32 -1e-12, %v1054_v23  ;;  %v1067_v23 = vld [vmem:[#allocation2 + $0x68] sm:$0xff] }
 0x29c   :  { %v1681_v21 = vpop.eup %1680 }
 0x2b6   :  { %v681_v61 = vpop.xlane.xlu1 %680 }
 0x2b7   :  { %v703_v50 = vadd.f32 %v681_v61, %v655_v57  ;;  %v665_v39 = vpop.xlane.xlu0 %664  ;;  %v484_v57 = vmul.f32 1.442695, %v3340_v47 }
 0x2b8   :  { %v695_v4 = vadd.f32 %v665_v39, %v647_v35  ;;  %v1762_v35 = vld [vmem:[%s3129_s2 + $0x40] sm:$0xff]  ;;  %v656_v39 = vmul.f32 %v1679_v25, %v640_v51 }
 0x2b9   :  { %720 = vst.msk [vmem:[#allocation3 + $0x48] sm:$0xff] %vm3319_vm4, %v703_v50  ;;  %vm1286_vm1 = vcmp.ge.s32.totalorder %v1762_v35, 0  ;;  %v2792_v50 = vld [vmem:[#allocation5 + $0x10] sm:$0xff]  ;;  %vm3349_vm4 = vmmov %vm3279_vm0  ;;  %v1058_v35 = vld [vmem:[#allocation2 + $0x20] sm:$0xff] }
 0x2ba   :  { %712 = vst.msk [vmem:[#allocation3 + $0x8] sm:$0xff] %vm3320_vm15, %v695_v4  ;;  %v663_v49 = vpop.xlane.xlu1 %662  ;;  %v1215_v4 = vsel %vm1199_vm10, 1.0, %v2767_v30  ;;  %v2814_v58 = vsel %vm1286_vm1, 1.0, %v3343_v40  ;;  %vm1200_vm7 = vcmp.eq.f32.partialorder %v2792_v50, 0.0 }
 0x2bb   :  { %v694_v56 = vadd.f32 %v663_v49, %v646_v24  ;;  %v2805_v24 = vsel %vm1280_vm11, 1.0, %v3343_v40  ;;  %vm3351_vm11 = vmmov %vm3279_vm0 }
 0x2bd   :  { %711 = vst.msk [vmem:[#allocation3] sm:$0xff] %vm3327_vm12, %v694_v56  ;;  %v2810_v56 = vld [vmem:[#allocation5] sm:$0xff] }
 0x2be   :  { %v679_v46 = vpop.xlane.xlu0 %678  ;;  %vm1198_vm5 = vcmp.eq.f32.partialorder %v2810_v56, 0.0 }
 0x2bf   :  { %v702_v19 = vadd.f32 %v679_v46, %v654_v2  ;;  %v1063_v2 = vld [vmem:[#allocation2 + $0x48] sm:$0xff]  ;;  %v1683_v46 = vpop.eup %1682  ;;  %v1214_v5 = vsel %vm1198_vm5, 1.0, %v2810_v56 }
 0x2c0   :  { %v1685_v29 = vpop.eup %1684  ;;  %v2833_v12 = vadd.f32 -1e-12, %v1063_v2  ;;  %v1031_v17 = vld [vmem:[#allocation3 + $0x48] sm:$0xff] }
 0x2c1   :  { %719 = vst.msk [vmem:[#allocation3 + $0x40] sm:$0xff] %vm3279_vm0, %v702_v19  ;;  %v1023_v27 = vld [vmem:[#allocation3 + $0x8] sm:$0xff]  ;;  %v651_v19 = vmul.f32 %v1681_v21, %v635_v8  ;;  %v659_v43 = vmul.f32 %v1685_v29, %v643_v3  ;;  %v636_v8 = vld [vmem:[#allocation3 + $0x30] sm:$0xff] }
 0x2c2   :  { %v669_v9 = vpop.xlane.xlu1 %668  ;;  %v1071_v44 = vadd.f32 1.6e-11, %v1023_v27  ;;  %v1057_v27 = vld [vmem:[#allocation2 + $0x18] sm:$0xff]  ;;  %v1087_v3 = vld [vmem:[#allocation4 + $0x8] sm:$0xff] }
 0x2c3   :  { %v697_v45 = vadd.f32 %v669_v9, %v649_v59  ;;  %v1216_v59 = vsel %vm1200_vm7, 1.0, %v2792_v50  ;;  %v2843_v10 = vadd.f32 -1e-12, %v1057_v27 }
 0x2c4   :  { %1686 = vlog2.f32 %v1071_v44  ;;  %v1022_v63 = vld [vmem:[#allocation3] sm:$0xff] }
 0x2c5   :  { %1688 = vpow2.f32 %v478_v32  ;;  %714 = vst.msk [vmem:[#allocation3 + $0x18] sm:$0xff] %vm3334_vm14, %v697_v45  ;;  %v1070_v54 = vadd.f32 1.6e-11, %v1022_v63  ;;  %v634_v32 = vld [vmem:[#allocation3 + $0x20] sm:$0xff]  ;;  %vm3350_vm14 = vmmov %vm3279_vm0 }
 0x2c6   :  { %v685_v28 = vpop.xlane.xlu1 %684  ;;  %v667_v36 = vpop.xlane.xlu0 %666  ;;  %1690 = vpow2.f32 %v468_v6  ;;  %v1062_v44 = vld [vmem:[#allocation2 + $0x40] sm:$0xff]  ;;  %v650_v1 = vmul.f32 %v1683_v46, %v634_v32  ;;  %v2867_v46 = vadd.f32 -1e-12, %v1058_v35 }
 0x2c7   :  { %v705_v15 = vadd.f32 %v685_v28, %v657_v22  ;;  %v696_v61 = vadd.f32 %v667_v36, %v648_v41  ;;  %1692 = vpow2.f32 %v466_v26  ;;  %v2835_v45 = vld [vmem:[#allocation5 + $0x20] sm:$0xff]  ;;  %v1056_v22 = vld [vmem:[#allocation2 + $0x10] sm:$0xff]  ;;  %v1065_v41 = vld [vmem:[#allocation2 + $0x58] sm:$0xff]  ;;  %v2847_v31 = vadd.f32 -1e-12, %v1062_v44 }
 0x2c8   :  { %1694 = vpow2.f32 %v484_v57  ;;  %v1064_v26 = vld [vmem:[#allocation2 + $0x50] sm:$0xff]  ;;  %vm1202_vm15 = vcmp.eq.f32.partialorder %v2835_v45, 0.0 }
 0x2c9   :  { %722 = vst.msk [vmem:[#allocation3 + $0x58] sm:$0xff] %vm3341_vm8, %v705_v15  ;;  %1696 = vrcp.f32 %v1215_v4  ;;  %v2845_v28 = vld [vmem:[#allocation5 + $0x30] sm:$0xff]  ;;  %v2850_v15 = vadd.f32 -1e-12, %v1056_v22  ;;  %v2854_v21 = vadd.f32 -1e-12, %v1064_v26  ;;  %vm3352_vm8 = vmmov %vm3279_vm0 }
 0x2ca   :  { %713 = vst.msk [vmem:[#allocation3 + $0x10] sm:$0xff] %vm3342_vm9, %v696_v61  ;;  %v683_v49 = vpop.xlane.xlu0 %682  ;;  %1698 = vlog2.f32 %v1070_v54  ;;  %v2852_v61 = vadd.f32 -1e-12, %v1065_v41  ;;  %v1030_v54 = vld [vmem:[#allocation3 + $0x40] sm:$0xff]  ;;  %vm1204_vm12 = vcmp.eq.f32.partialorder %v2845_v28, 0.0  ;;  %v1218_v38 = vsel %vm1202_vm15, 1.0, %v2835_v45 }
 0x2cb   :  { %v704_v34 = vadd.f32 %v683_v49, %v656_v39  ;;  %1700 = vpow2.f32 %v482_v0  ;;  %v637_v39 = vld [vmem:[#allocation3 + $0x38] sm:$0xff]  ;;  %v1078_v32 = vadd.f32 1.6e-11, %v1030_v54  ;;  %v1220_v27 = vsel %vm1204_vm12, 1.0, %v2845_v28  ;;  %v2879_v41 = vld [vmem:[#allocation5 + $0x60] sm:$0xff] }
 0x2cc   :  { %v1025_v18 = vld [vmem:[#allocation3 + $0x18] sm:$0xff]  ;;  %vm1210_vm3 = vcmp.eq.f32.partialorder %v2879_v41, 0.0 }
 0x2cd   :  { %721 = vst.msk [vmem:[#allocation3 + $0x50] sm:$0xff] %vm3348_vm13, %v704_v34  ;;  %v1073_v42 = vadd.f32 1.6e-11, %v1025_v18  ;;  %v1079_v34 = vadd.f32 1.6e-11, %v1031_v17  ;;  %v2865_v18 = vld [vmem:[#allocation5 + $0x50] sm:$0xff] }
 0x2ce   :  { %v673_v37 = vpop.xlane.xlu1 %672  ;;  %vm1208_vm1 = vcmp.eq.f32.partialorder %v2865_v18, 0.0  ;;  %v2881_v26 = vld [vmem:[#allocation5 + $0x18] sm:$0xff] }
 0x2cf   :  { %v699_v9 = vadd.f32 %v673_v37, %v651_v19  ;;  %1702 = vlog2.f32 %v1073_v42  ;;  %v2869_v19 = vadd.f32 -1e-12, %v1059_v11  ;;  %v1224_v35 = vsel %vm1208_vm1, 1.0, %v2865_v18 }
 0x2d0   :  { %v1033_v55 = vld [vmem:[#allocation3 + $0x58] sm:$0xff]  ;;  %vm1201_vm9 = vcmp.eq.f32.partialorder %v2881_v26, 0.0 }
 0x2d1   :  { %v1024_v6 = vld [vmem:[#allocation3 + $0x10] sm:$0xff]  ;;  %v1687_v25 = vpop.eup %1686  ;;  %716 = vst.msk [vmem:[#allocation3 + $0x28] sm:$0xff] %vm3349_vm4, %v699_v9  ;;  %v645_v9 = vld [vmem:[#allocation3 + $0x78] sm:$0xff]  ;;  %v1081_v44 = vadd.f32 1.6e-11, %v1033_v55 }
 0x2d2   :  { %v1072_v52 = vadd.f32 1.6e-11, %v1024_v6  ;;  %v1689_v36 = vpop.eup %1688  ;;  %v689_v51 = vpop.xlane.xlu1 %688  ;;  %v1121_v16 = vmul.f32 0.6931472, %v1687_v25 }
 0x2d3   :  { %v671_v63 = vpop.xlane.xlu0 %670  ;;  %v707_v47 = vadd.f32 %v689_v51, %v659_v43  ;;  %v658_v49 = vmul.f32 %v1689_v36, %v642_v60  ;;  %v1691_v0 = vpop.eup %1690  ;;  %v2883_v36 = vadd.f32 -1e-12, %v1067_v23 }
 0x2d4   :  { %v698_v57 = vadd.f32 %v671_v63, %v650_v1  ;;  %v1151_v4 = vadd.f32 %v1472_v7, %v1121_v16  ;;  %1704 = vlog2.f32 %v1072_v52  ;;  %v1693_v29 = vpop.eup %1692  ;;  %v653_v6 = vmul.f32 %v1691_v0, %v637_v39  ;;  %v1032_v17 = vld [vmem:[#allocation3 + $0x50] sm:$0xff] }
 0x2d5   :  { %724 = vst.msk [vmem:[#allocation3 + $0x68] sm:$0xff] %vm3279_vm0, %v707_v47  ;;  %1706 = vrcp.f32 %v1216_v59  ;;  %v2871_v59 = vadd.f32 -1e-12, %v1066_v33  ;;  %v1695_v42 = vpop.eup %1694  ;;  %v652_v1 = vmul.f32 %v1693_v29, %v636_v8  ;;  %v1222_v16 = vsel %vm1206_vm6, 1.0, %v2859_v14  ;;  %v1060_v39 = vld [vmem:[#allocation2 + $0x30] sm:$0xff] }
 0x2d6   :  { %715 = vst.msk [vmem:[#allocation3 + $0x20] sm:$0xff] %vm3350_vm14, %v698_v57  ;;  %v1167_v2 = vmul.f32 %v1151_v4, %v2767_v30  ;;  %1708 = vrcp.f32 %v1214_v5  ;;  %v1697_v5 = vpop.eup %1696  ;;  %v661_v63 = vmul.f32 %v1695_v42, %v645_v9  ;;  %v644_v57 = vld [vmem:[#allocation3 + $0x70] sm:$0xff]  ;;  %v1080_v55 = vadd.f32 1.6e-11, %v1032_v17  ;;  %v1061_v9 = vld [vmem:[#allocation2 + $0x38] sm:$0xff]  ;;  %vm3356_vm14 = vmmov %vm3355_vm2 }
 0x2d7   :  { %v687_v62 = vpop.xlane.xlu0 %686  ;;  %1710 = vrcp.f32 %v1218_v38  ;;  %v1699_v25 = vpop.eup %1698  ;;  %v2896_v30 = vld [vmem:[#allocation5 + $0x70] sm:$0xff]  ;;  %v2904_v42 = vadd.f32 -1e-12, %v1060_v39 }
 0x2d8   :  { %v706_v37 = vadd.f32 %v687_v62, %v658_v49  ;;  %v1183_v7 = vsub.f32 %v1087_v3, %v1167_v2  ;;  %v1027_v60 = vld [vmem:[#allocation3 + $0x28] sm:$0xff]  ;;  %1712 = vlog2.f32 %v1079_v34  ;;  %v1701_v4 = vpop.eup %1700  ;;  %v1119_v33 = vmul.f32 0.6931472, %v1699_v25  ;;  %3353 = vst [vmem:[#allocation48_spill] sm:$0xff] %v2896_v30  ;;  %v1068_v17 = vld [vmem:[#allocation2 + $0x70] sm:$0xff] }
 0x2d9   :  { %v1075_v22 = vadd.f32 1.6e-11, %v1027_v60  ;;  %1714 = vrcp.f32 %v1220_v27  ;;  %v2898_v34 = vld [vmem:[#allocation5 + $0x48] sm:$0xff]  ;;  %v660_v3 = vmul.f32 %v1701_v4, %v644_v57  ;;  %v1226_v27 = vsel %vm1210_vm3, 1.0, %v2879_v41  ;;  %v847_v57 = vld [vmem:[#allocation4 + $0x20] sm:$0xff] }
 0x2da   :  { %723 = vst.msk [vmem:[#allocation3 + $0x60] sm:$0xff] %vm3351_vm11, %v706_v37  ;;  %v677_v43 = vpop.xlane.xlu1 %676  ;;  %v1233_v52 = vmul.f32 %v1697_v5, %v1183_v7  ;;  %1716 = vlog2.f32 %v1078_v32  ;;  %v848_v37 = vld [vmem:[#allocation4 + $0x28] sm:$0xff]  ;;  %vm1207_vm13 = vcmp.eq.f32.partialorder %v2898_v34, 0.0  ;;  %vm3186_vm4 = vcmp.eq.f32.partialorder %v2896_v30, 0.0  ;;  %vm3357_vm11 = vmmov %vm3355_vm2 }
 0x2db   :  { %v701_v51 = vadd.f32 %v677_v43, %v653_v6  ;;  %1718 = vlog2.f32 %v1081_v44  ;;  %v1765_v4 = vld [vmem:[%s3129_s2 + $0x48] sm:$0xff] }
 0x2dc   :  { %v1263_v47 = vsel %vm1199_vm10, 0.0, %v1233_v52  ;;  %1720 = vlog2.f32 %v1075_v22  ;;  %v1035_v0 = vld [vmem:[#allocation3 + $0x68] sm:$0xff]  ;;  %v1703_v62 = vpop.eup %1702  ;;  %vm3354_vm10 = vmmov %vm3279_vm0  ;;  %v1150_v22 = vadd.f32 %v2837_v48, %v1119_v33  ;;  %v1228_v48 = vsel %vm3186_vm4, 1.0, %v2896_v30  ;;  %v2977_v30 = vld [vmem:[#allocation5 + $0x78] sm:$0xff] }
 0x2dd   :  { %v1026_v11 = vld [vmem:[#allocation3 + $0x20] sm:$0xff]  ;;  %718 = vst.msk [vmem:[#allocation3 + $0x38] sm:$0xff] %vm3352_vm8, %v701_v51  ;;  %v1327_v54 = vmul.f32 -14.285714, %v1263_v47  ;;  %1722 = vrcp.f32 %v1222_v16  ;;  %v1083_v44 = vadd.f32 1.6e-11, %v1035_v0 }
 0x2de   :  { %v693_v49 = vpop.xlane.xlu1 %692  ;;  %v675_v8 = vpop.xlane.xlu0 %674  ;;  %v1074_v38 = vadd.f32 1.6e-11, %v1026_v11  ;;  %1724 = vrcp.f32 %v1224_v35  ;;  %v1125_v25 = vmul.f32 0.6931472, %v1703_v62  ;;  %v2920_v16 = vadd.f32 -1e-12, %v1061_v9 }
 0x2df   :  { %v709_v2 = vadd.f32 %v693_v49, %v661_v63  ;;  %v700_v23 = vadd.f32 %v675_v8, %v652_v1  ;;  %v1343_v29 = vmul.f32 %v2801_v13, %v1327_v54  ;;  %v1217_v13 = vsel %vm1201_vm9, 1.0, %v2881_v26  ;;  %v2918_v63 = vld [vmem:[#allocation5 + $0x58] sm:$0xff]  ;;  %v2935_v33 = vld [vmem:[#allocation5 + $0x28] sm:$0xff]  ;;  %v849_v9 = vld [vmem:[#allocation4 + $0x30] sm:$0xff] }
 0x2e0   :  { %1726 = vlog2.f32 %v1074_v38  ;;  %v850_v47 = vld [vmem:[#allocation4 + $0x38] sm:$0xff]  ;;  %vm1287_vm0 = vcmp.ge.s32.totalorder %v1765_v4, 0  ;;  %v1223_v54 = vsel %vm1207_vm13, 1.0, %v2898_v34  ;;  %v1166_v62 = vmul.f32 %v1150_v22, %v2810_v56  ;;  %v1086_v22 = vld [vmem:[#allocation4] sm:$0xff] }
 0x2e1   :  { %v1034_v32 = vld [vmem:[#allocation3 + $0x60] sm:$0xff]  ;;  %v1705_v7 = vpop.eup %1704  ;;  %726 = vst.msk [vmem:[#allocation3 + $0x78] sm:$0xff] %vm3354_vm10, %v709_v2  ;;  %1365 = vperm.xlu1 %1631, %v1343_v29   ;;  %1728 = vlog2.f32 %v1080_v55  ;;  %v2937_v49 = vld [vmem:[#allocation5 + $0x38] sm:$0xff]  ;;  %v1153_v2 = vadd.f32 %v2843_v10, %v1125_v25  ;;  %vm1209_vm8 = vcmp.eq.f32.partialorder %v2918_v63, 0.0  ;;  %vm1203_vm10 = vcmp.eq.f32.partialorder %v2935_v33, 0.0  ;;  %v2958_v25 = vld [vmem:[#allocation5 + $0x68] sm:$0xff] }
 0x2e2   :  { %717 = vst.msk [vmem:[#allocation3 + $0x30] sm:$0xff] %vm3355_vm2, %v700_v23  ;;  %v2913_v60 = vpop.eup %1706  ;;  %v886_v5 = vpop.xlane.xlu1 %885  ;;  %v1082_v43 = vadd.f32 1.6e-11, %v1034_v32  ;;  %1730 = vrcp.f32 %v1226_v27  ;;  %v1123_v35 = vmul.f32 0.6931472, %v1705_v7  ;;  %vm1205_vm2 = vcmp.eq.f32.partialorder %v2937_v49, 0.0 }
 0x2e3   :  { %v691_v6 = vpop.xlane.xlu0 %690  ;;  %v2916_v1 = vpop.eup %1708  ;;  %v912_v52 = vadd.f32 %v886_v5, %v848_v37  ;;  %1732 = vrcp.f32 %v1217_v13  ;;  %v2944_v32 = vadd.f32 -1e-12, %v1068_v17  ;;  %v2951_v5 = vsel %vm1287_vm0, 1.0, %v3343_v40 }
 0x2e4   :  { %v708_v51 = vadd.f32 %v691_v6, %v660_v3  ;;  %v1029_v11 = vld [vmem:[#allocation3 + $0x38] sm:$0xff]  ;;  %v2925_v39 = vpop.eup %1710  ;;  %1734 = vlog2.f32 %v1083_v44  ;;  %v852_v3 = vld [vmem:[#allocation4 + $0x48] sm:$0xff]  ;;  %v1152_v7 = vadd.f32 %v2850_v15, %v1123_v35  ;;  %v1225_v15 = vsel %vm1209_vm8, 1.0, %v2918_v63 }
 0x2e5   :  { %928 = vst.msk [vmem:[#allocation4 + $0x28] sm:$0xff] %vm3356_vm14, %v912_v52  ;;  %v1077_v8 = vadd.f32 1.6e-11, %v1029_v11  ;;  %v1713_v55 = vpop.eup %1712  ;;  %1736 = vlog2.f32 %v1082_v43  ;;  %3359 = vst [vmem:[#allocation14_spill] sm:$0xff] %v2944_v32  ;;  %v1182_v17 = vsub.f32 %v1086_v22, %v1166_v62  ;;  %v851_v62 = vld [vmem:[#allocation4 + $0x40] sm:$0xff]  ;;  %vm1211_vm0 = vcmp.eq.f32.partialorder %v2958_v25, 0.0 }
 0x2e6   :  { %725 = vst.msk [vmem:[#allocation3 + $0x70] sm:$0xff] %vm3357_vm11, %v708_v51  ;;  %v890_v38 = vpop.xlane.xlu1 %889  ;;  %v2942_v23 = vpop.eup %1714  ;;  %1738 = vrcp.f32 %v1228_v48  ;;  %vm3360_vm14 = vmmov %vm3357_vm11  ;;  %v1137_v6 = vmul.f32 0.6931472, %v1713_v55  ;;  %v1221_v55 = vsel %vm1205_vm2, 1.0, %v2937_v49  ;;  %vm1213_vm4 = vcmp.eq.f32.partialorder %v2977_v30, 0.0 }
 0x2e7   :  { %v884_v0 = vpop.xlane.xlu0 %883  ;;  %3358 = vst [vmem:[#allocation51_spill] sm:$0xff] %v2942_v23  ;;  %v914_v29 = vadd.f32 %v890_v38, %v850_v47  ;;  %v1717_v27 = vpop.eup %1716  ;;  %1740 = vlog2.f32 %v1077_v8  ;;  %v1169_v47 = vmul.f32 %v1153_v2, %v2881_v26  ;;  %v1219_v8 = vsel %vm1203_vm10, 1.0, %v2935_v33  ;;  %v1069_v38 = vld [vmem:[#allocation2 + $0x78] sm:$0xff] }
 0x2e8   :  { %v911_v37 = vadd.f32 %v884_v0, %v847_v57  ;;  %v1037_v10 = vld [vmem:[#allocation3 + $0x78] sm:$0xff]  ;;  %v1719_v44 = vpop.eup %1718  ;;  %1742 = vrcp.f32 %v1223_v54  ;;  %v1135_v2 = vmul.f32 0.6931472, %v1717_v27  ;;  %v1159_v27 = vadd.f32 %v2833_v12, %v1137_v6 }
 0x2e9   :  { %v1028_v13 = vld [vmem:[#allocation3 + $0x30] sm:$0xff]  ;;  %930 = vst.msk [vmem:[#allocation4 + $0x38] sm:$0xff] %vm3360_vm14, %v914_v29  ;;  %v1721_v43 = vpop.eup %1720  ;;  %v1085_v35 = vadd.f32 1.6e-11, %v1037_v10  ;;  %v854_v54 = vld [vmem:[#allocation4 + $0x58] sm:$0xff]  ;;  %v1168_v29 = vmul.f32 %v1152_v7, %v2792_v50  ;;  %vm3361_vm14 = vmmov %vm3357_vm11  ;;  %v1231_v7 = vmul.f32 %v2916_v1, %v1182_v17 }
 0x2ea   :  { %927 = vst.msk [vmem:[#allocation4 + $0x20] sm:$0xff] %vm3357_vm11, %v911_v37  ;;  %v894_v52 = vpop.xlane.xlu1 %893  ;;  %v1076_v57 = vadd.f32 1.6e-11, %v1028_v13  ;;  %v2961_v11 = vpop.eup %1722  ;;  %v1089_v37 = vld [vmem:[#allocation4 + $0x18] sm:$0xff]  ;;  %v1141_v13 = vmul.f32 0.6931472, %v1719_v44 }
 0x2eb   :  { %v888_v51 = vpop.xlane.xlu0 %887  ;;  %v916_v48 = vadd.f32 %v894_v52, %v852_v3  ;;  %v2969_v0 = vpop.eup %1724  ;;  %v1129_v10 = vmul.f32 0.6931472, %v1721_v43  ;;  %v1185_v23 = vsub.f32 %v1089_v37, %v1169_v47  ;;  %v853_v43 = vld [vmem:[#allocation4 + $0x50] sm:$0xff]  ;;  %v2982_v12 = vadd.f32 -1e-12, %v1069_v38  ;;  %v858_v37 = vld [vmem:[#allocation4 + $0x78] sm:$0xff] }
 0x2ec   :  { %v913_v4 = vadd.f32 %v888_v51, %v849_v9  ;;  %1744 = vlog2.f32 %v1076_v57  ;;  %v1161_v6 = vadd.f32 %v2852_v61, %v1141_v13  ;;  %v1227_v47 = vsel %vm1211_vm0, 1.0, %v2958_v25  ;;  %v3022_v50 = vld [vmem:[%s3129_s2 + $0x50] sm:$0xff] }
 0x2ed   :  { %v1036_v3 = vld [vmem:[#allocation3 + $0x70] sm:$0xff]  ;;  %v1727_v9 = vpop.eup %1726  ;;  %932 = vst.msk [vmem:[#allocation4 + $0x48] sm:$0xff] %vm3361_vm14, %v916_v48  ;;  %1746 = vrcp.f32 %v1225_v15  ;;  %v856_v15 = vld [vmem:[#allocation4 + $0x68] sm:$0xff]  ;;  %vm3362_vm14 = vmmov %vm3357_vm11  ;;  %v1155_v17 = vadd.f32 %v2869_v19, %v1129_v10  ;;  %v1175_v19 = vmul.f32 %v1159_v27, %v2898_v34 }
 0x2ee   :  { %929 = vst.msk [vmem:[#allocation4 + $0x30] sm:$0xff] %vm3357_vm11, %v913_v4  ;;  %v1084_v22 = vadd.f32 1.6e-11, %v1036_v3  ;;  %v898_v52 = vpop.xlane.xlu1 %897  ;;  %1748 = vlog2.f32 %v1085_v35  ;;  %v1729_v57 = vpop.eup %1728  ;;  %v1088_v48 = vld [vmem:[#allocation4 + $0x10] sm:$0xff]  ;;  %v1127_v20 = vmul.f32 0.6931472, %v1727_v9  ;;  %v1158_v4 = vadd.f32 %v2847_v31, %v1135_v2 }
 0x2ef   :  { %v892_v51 = vpop.xlane.xlu0 %891  ;;  %v918_v40 = vadd.f32 %v898_v52, %v854_v54  ;;  %v2979_v44 = vpop.eup %1730  ;;  %v1184_v3 = vsub.f32 %v1088_v48, %v1168_v29  ;;  %v855_v9 = vld [vmem:[#allocation4 + $0x60] sm:$0xff]  ;;  %v1171_v52 = vmul.f32 %v1155_v17, %v2935_v33 }
 0x2f0   :  { %v915_v32 = vadd.f32 %v892_v51, %v851_v62  ;;  %1750 = vlog2.f32 %v1084_v22  ;;  %v1733_v1 = vpop.eup %1732  ;;  %v1154_v2 = vadd.f32 %v2867_v46, %v1127_v20  ;;  %v1174_v10 = vmul.f32 %v1158_v4, %v2859_v14 }
 0x2f1   :  { %1752 = vrcp.f32 %v1219_v8  ;;  %934 = vst.msk [vmem:[#allocation4 + $0x58] sm:$0xff] %vm3362_vm14, %v918_v40  ;;  %v1735_v31 = vpop.eup %1734  ;;  %v1262_v8 = vsel %vm1198_vm5, 0.0, %v1231_v7  ;;  %v1237_v38 = vmul.f32 %v1733_v1, %v1185_v23  ;;  %v1139_v40 = vmul.f32 0.6931472, %v1729_v57  ;;  %vm3363_vm5 = vmmov %vm3357_vm11 }
 0x2f2   :  { %931 = vst.msk [vmem:[#allocation4 + $0x40] sm:$0xff] %vm3357_vm11, %v915_v32  ;;  %v902_v35 = vpop.xlane.xlu1 %901  ;;  %1754 = vrcp.f32 %v1221_v55  ;;  %v1737_v32 = vpop.eup %1736  ;;  %v1235_v56 = vmul.f32 %v2913_v60, %v1184_v3  ;;  %v1229_v23 = vsel %vm1213_vm4, 1.0, %v2977_v30  ;;  %vm3364_vm14 = vmmov %vm3363_vm5  ;;  %v3005_v46 = vmul.f32 -14.285714, %v1262_v8  ;;  %v857_v3 = vld [vmem:[#allocation4 + $0x70] sm:$0xff] }
 0x2f3   :  { %v896_v54 = vpop.xlane.xlu0 %895  ;;  %v920_v62 = vadd.f32 %v902_v35, %v856_v15  ;;  %v2996_v29 = vpop.eup %1738  ;;  %1756 = vrcp.f32 %v1227_v47  ;;  %v1177_v22 = vmul.f32 %v1161_v6, %v2918_v63  ;;  %v1265_v7 = vsel %vm1201_vm9, 0.0, %v1237_v38  ;;  %vm3365_vm9 = vmmov %vm3363_vm5 }
 0x2f4   :  { %v917_v61 = vadd.f32 %v896_v54, %v853_v43  ;;  %v1095_v13 = vld [vmem:[#allocation4 + $0x48] sm:$0xff]  ;;  %v1741_v55 = vpop.eup %1740  ;;  %v1160_v57 = vadd.f32 %v2854_v21, %v1139_v40  ;;  %v1143_v48 = vmul.f32 0.6931472, %v1737_v32  ;;  %v1145_v15 = vmul.f32 0.6931472, %v1735_v31  ;;  %vm3366_vm11 = vmmov %vm3363_vm5 }
 0x2f5   :  { %936 = vst.msk [vmem:[#allocation4 + $0x68] sm:$0xff] %vm3363_vm5, %v920_v62  ;;  %v1191_v20 = vsub.f32 %v1095_v13, %v1175_v19  ;;  %v1743_v51 = vpop.eup %1742  ;;  %v1170_v47 = vmul.f32 %v1154_v2, %v2835_v45  ;;  %v1264_v6 = vsel %vm1200_vm7, 0.0, %v1235_v56  ;;  %v1091_v54 = vld [vmem:[#allocation4 + $0x28] sm:$0xff]  ;;  %v1133_v8 = vmul.f32 0.6931472, %v1741_v55  ;;  %v1090_v19 = vld [vmem:[#allocation4 + $0x20] sm:$0xff] }
 0x2f6   :  { %933 = vst.msk [vmem:[#allocation4 + $0x50] sm:$0xff] %vm3364_vm14, %v917_v61  ;;  %v906_v27 = vpop.xlane.xlu1 %905  ;;  %1758 = vrcp.f32 %v1229_v23  ;;  %v1187_v40 = vsub.f32 %v1091_v54, %v1171_v52  ;;  %vm1288_vm7 = vcmp.ge.s32.totalorder %v3022_v50, 0  ;;  %v1162_v2 = vadd.f32 %v2871_v59, %v1143_v48  ;;  %v3030_v13 = vld [vmem:[%s3129_s2 + $0x20] sm:$0xff]  ;;  %v1771_v50 = vld [vmem:[%s3129_s2 + $0x68] sm:$0xff] }
 0x2f7   :  { %v900_v60 = vpop.xlane.xlu0 %899  ;;  %v922_v43 = vadd.f32 %v906_v27, %v858_v37  ;;  %v1249_v1 = vmul.f32 %v1743_v51, %v1191_v20  ;;  %v1163_v37 = vadd.f32 %v2883_v36, %v1145_v15  ;;  %v1176_v23 = vmul.f32 %v1160_v57, %v2865_v18 }
 0x2f8   :  { %v919_v4 = vadd.f32 %v900_v60, %v855_v9  ;;  %v1097_v17 = vld [vmem:[#allocation4 + $0x58] sm:$0xff]  ;;  %v1186_v55 = vsub.f32 %v1090_v19, %v1170_v47  ;;  %v1329_v36 = vmul.f32 -14.285714, %v1265_v7  ;;  %v1157_v51 = vadd.f32 %v2920_v16, %v1133_v8 }
 0x2f9   :  { %v1094_v35 = vld [vmem:[#allocation4 + $0x40] sm:$0xff]  ;;  %v1745_v26 = vpop.eup %1744  ;;  %938 = vst.msk [vmem:[#allocation4 + $0x78] sm:$0xff] %vm3365_vm9, %v922_v43  ;;  %v1271_v21 = vsel %vm1207_vm13, 0.0, %v1249_v1  ;;  %v1193_v38 = vsub.f32 %v1097_v17, %v1177_v22  ;;  %vm1282_vm13 = vcmp.ge.s32.totalorder %v3030_v13, 0  ;;  %v1328_v22 = vmul.f32 -14.285714, %v1264_v6 }
 0x2fa   :  { %935 = vst.msk [vmem:[#allocation4 + $0x60] sm:$0xff] %vm3366_vm11, %v919_v4  ;;  %v1190_v31 = vsub.f32 %v1094_v35, %v1174_v10  ;;  %v1747_v32 = vpop.eup %1746  ;;  %v1335_v61 = vmul.f32 -14.285714, %v1271_v21  ;;  %v1131_v34 = vmul.f32 0.6931472, %v1745_v26  ;;  %v1179_v7 = vmul.f32 %v1163_v37, %v2958_v25 }
 0x2fb   :  { %v904_v62 = vpop.xlane.xlu0 %903  ;;  %v1749_v9 = vpop.eup %1748  ;;  %v1253_v15 = vmul.f32 %v1747_v32, %v1193_v38  ;;  %v1239_v1 = vmul.f32 %v2925_v39, %v1186_v55  ;;  %v1342_v6 = vmul.f32 %v2819_v53, %v3005_v46  ;;  %v1173_v54 = vmul.f32 %v1157_v51, %v2937_v49  ;;  %v1769_v53 = vld [vmem:[%s3129_s2 + $0x58] sm:$0xff]  ;;  %v3367_v46 = vld [vmem:[#allocation12_spill] sm:$0xff]  ;;  %v3368_v32 = vld [vmem:[#allocation14_spill] sm:$0xff] }
 0x2fc   :  { %v921_v10 = vadd.f32 %v904_v62, %v857_v3  ;;  %v1247_v56 = vmul.f32 %v2961_v11, %v1190_v31  ;;  %v1351_v59 = vmul.f32 %v2951_v5, %v1335_v61  ;;  %v1099_v11 = vld [vmem:[#allocation4 + $0x68] sm:$0xff]  ;;  %v1156_v57 = vadd.f32 %v2904_v42, %v1131_v34  ;;  %v1092_v34 = vld [vmem:[#allocation4 + $0x30] sm:$0xff]  ;;  %v1770_v55 = vld [vmem:[%s3129_s2 + $0x60] sm:$0xff] }
 0x2fd   :  { %v1751_v20 = vpop.eup %1750  ;;  %v1096_v52 = vld [vmem:[#allocation4 + $0x50] sm:$0xff]  ;;  %v1178_v5 = vmul.f32 %v1162_v2, %v2879_v41  ;;  %v1149_v14 = vmul.f32 0.6931472, %v1749_v9  ;;  %v1195_v17 = vsub.f32 %v1099_v11, %v1179_v7  ;;  %vm1289_vm14 = vcmp.ge.s32.totalorder %v1769_v53, 0 }
 0x2fe   :  { %v1753_v27 = vpop.eup %1752  ;;  %937 = vst.msk [vmem:[#allocation4 + $0x70] sm:$0xff] %vm3363_vm5, %v921_v10  ;;  %v1270_v60 = vsel %vm1206_vm6, 0.0, %v1247_v56  ;;  %v1192_v48 = vsub.f32 %v1096_v52, %v1176_v23  ;;  %1405 = vperm.xlu0 %1630, %v1351_v59   ;;  %v1147_v47 = vmul.f32 0.6931472, %v1751_v20  ;;  %v1172_v39 = vmul.f32 %v1156_v57, %v2845_v28  ;;  %v3371_v57 = vld [vmem:[#allocation51_spill] sm:$0xff] }
 0x2ff   :  { %v1334_v43 = vmul.f32 -14.285714, %v1270_v60  ;;  %v1241_v4 = vmul.f32 %v1753_v27, %v1187_v40  ;;  %v1755_v3 = vpop.eup %1754  ;;  %v1344_v18 = vmul.f32 %v2805_v24, %v1328_v22  ;;  %v1345_v63 = vmul.f32 %v3367_v46, %v1329_v36  ;;  %v1093_v40 = vld [vmem:[#allocation4 + $0x38] sm:$0xff]  ;;  %v3370_v36 = vld [vmem:[#allocation48_spill] sm:$0xff] }
 0x300   :  { %v1251_v16 = vmul.f32 %v2969_v0, %v1192_v48  ;;  %v1757_v8 = vpop.eup %1756  ;;  %v1273_v0 = vsel %vm1209_vm8, 0.0, %v1253_v15  ;;  %v1266_v31 = vsel %vm1202_vm15, 0.0, %v1239_v1  ;;  %v1164_v62 = vadd.f32 %v3368_v32, %v1147_v47  ;;  %v1101_v59 = vld [vmem:[#allocation4 + $0x78] sm:$0xff] }
 0x301   :  { %v1350_v35 = vmul.f32 %v2814_v58, %v1334_v43  ;;  %v1098_v42 = vld [vmem:[#allocation4 + $0x60] sm:$0xff]  ;;  %v1768_v58 = vld [vmem:[%s3129_s2 + $0x28] sm:$0xff]  ;;  %v1267_v38 = vsel %vm1203_vm10, 0.0, %v1241_v4  ;;  %v1165_v61 = vadd.f32 %v2982_v12, %v1149_v14  ;;  %v1337_v2 = vmul.f32 -14.285714, %v1273_v0 }
 0x302   :  { %v1272_v26 = vsel %vm1208_vm1, 0.0, %v1251_v16  ;;  %v1194_v21 = vsub.f32 %v1098_v42, %v1178_v5  ;;  %vm1283_vm6 = vcmp.ge.s32.totalorder %v1768_v58, 0  ;;  %1360 = vperm.xlu0 %1630, %v1342_v6   ;;  %v1257_v37 = vmul.f32 %v1757_v8, %v1195_v17  ;;  %v1772_v42 = vld [vmem:[%s3129_s2 + $0x30] sm:$0xff]  ;;  %v1773_v17 = vld [vmem:[%s3129_s2 + $0x38] sm:$0xff] }
 0x303   :  { %1400 = vperm.xlu1 %1631, %v1350_v35   ;;  %v1336_v19 = vmul.f32 -14.285714, %v1272_v26  ;;  %v1189_v9 = vsub.f32 %v1093_v40, %v1173_v54  ;;  %v1759_v10 = vpop.eup %1758  ;;  %v3369_v24 = vmov 0.0   ;;  %v1188_v23 = vsub.f32 %v1092_v34, %v1172_v39  ;;  %v1774_v39 = vld [vmem:[%s3129_s2 + $0x70] sm:$0xff]  ;;  %v1775_v58 = vld [vmem:[%s3129_s2 + $0x78] sm:$0xff]  ;;  %s1826_s2 = smov [#allocation9]  }
 0x304   :  { %v1497_v56 = vsel %vm1288_vm7, 1.0, %v3369_v24  ;;  %v1498_v45 = vsel %vm1289_vm14, 1.0, %v3369_v24  ;;  %v1255_v33 = vmul.f32 %v2979_v44, %v1194_v21  ;;  %v1491_v12 = vsel %vm1282_vm13, 1.0, %v3369_v24  ;;  %s1459_s14 = sshll.u32 %s1826_s2, 4  ;;  %s1460_s14 = int_to_ptr.vmem [resolvable:$true] %s1459_s14 }
 0x305   :  { %vm1290_vm15 = vcmp.ge.s32.totalorder %v1770_v55, 0  ;;  %v1492_v20 = vsel %vm1283_vm6, 1.0, %v3369_v24  ;;  %vm1291_vm1 = vcmp.ge.s32.totalorder %v1771_v50, 0  ;;  %v1100_v44 = vld [vmem:[#allocation4 + $0x70] sm:$0xff]  ;;  %v1330_v22 = vmul.f32 -14.285714, %v1266_v31  ;;  %p1801_p6 = scmp.lt.s32.totalorder %s1460_s14, %s1460_s14 }
 0x306   :  { %1375 = vperm.xlu0 %1630, %v1345_v63   ;;  %v1331_v13 = vmul.f32 -14.285714, %v1267_v38  ;;  %v1180_v52 = vmul.f32 %v1164_v62, %v3370_v36  ;;  %v1181_v51 = vmul.f32 %v1165_v61, %v2977_v30  ;;  %v1352_v27 = vmul.f32 %v1497_v56, %v1336_v19  ;;  %s1796_s15 = scalar_lea.vmem %s1460_s14, 2048 }
 0x307   :  { %1370 = vperm.xlu1 %1631, %v1344_v18   ;;  %v1353_v60 = vmul.f32 %v1498_v45, %v1337_v2  ;;  %v1275_v48 = vsel %vm1211_vm0, 0.0, %v1257_v37  ;;  %v1245_v15 = vmul.f32 %v1755_v3, %v1189_v9  ;;  %v1274_v11 = vsel %vm1210_vm3, 0.0, %v1255_v33  ;;  %p1797_p5 = scmp.ne.s32.totalorder %s1460_s14, %s1796_s15  ;;  %p1802_p7 = scmp.lt.s32.totalorder %s1796_s15, %s1796_s15 }
 0x308   :  { %v1243_v43 = vmul.f32 %v3371_v57, %v1188_v23  ;;  %v1196_v4 = vsub.f32 %v1100_v44, %v1180_v52  ;;  %v1197_v5 = vsub.f32 %v1101_v59, %v1181_v51  ;;  %v1499_v7 = vsel %vm1290_vm15, 1.0, %v3369_v24 }
 0x309   :  { %v1500_v16 = vsel %vm1291_vm1, 1.0, %v3369_v24  ;;  %v1346_v1 = vmul.f32 %v1491_v12, %v1330_v22  ;;  %v1347_v47 = vmul.f32 %v1492_v20, %v1331_v13  ;;  %v1338_v25 = vmul.f32 -14.285714, %v1274_v11  ;;  %p1803_p8 = por %p1802_p7, %p1801_p6 }
 0x30a   :  { %1415 = vperm.xlu0 %1630, %v1353_v60   ;;  %v1339_v14 = vmul.f32 -14.285714, %v1275_v48  ;;  %v1268_v41 = vsel %vm1204_vm12, 0.0, %v1243_v43  ;;  %v1269_v3 = vsel %vm1205_vm2, 0.0, %v1245_v15  ;;  %v1259_v35 = vmul.f32 %v2996_v29, %v1196_v4 }
 0x30b   :  { %1410 = vperm.xlu1 %1631, %v1352_v27   ;;  %v1261_v6 = vmul.f32 %v1759_v10, %v1197_v5  ;;  %vm1284_vm3 = vcmp.ge.s32.totalorder %v1772_v42, 0  ;;  %vm1285_vm8 = vcmp.ge.s32.totalorder %v1773_v17, 0  ;;  %v1354_v28 = vmul.f32 %v1499_v7, %v1338_v25  ;;  %p1804_p9 = pnand %p1803_p8, %p1797_p5 }
 0x30c   :  { %v1355_v54 = vmul.f32 %v1500_v16, %v1339_v14  ;;  %v1332_v8 = vmul.f32 -14.285714, %v1268_v41  ;;  %v1333_v49 = vmul.f32 -14.285714, %v1269_v3  ;;  %v1493_v26 = vsel %vm1284_vm3, 1.0, %v3369_v24 }
 0x30d   :  { %v1494_v29 = vsel %vm1285_vm8, 1.0, %v3369_v24  ;;  %vm3372_vm12 = vcmp.eq.f32.partialorder %v3370_v36, 0.0  ;;  %v1277_v21 = vsel %vm1213_vm4, 0.0, %v1261_v6  ;;  %vm1292_vm10 = vcmp.ge.s32.totalorder %v1774_v39, 0 }
 0x30e   :  { %1385 = vperm.xlu0 %1630, %v1347_v47   ;;  %v1276_v0 = vsel %vm3372_vm12, 0.0, %v1259_v35  ;;  %vm1293_vm2 = vcmp.ge.s32.totalorder %v1775_v58, 0  ;;  %v1348_v53 = vmul.f32 %v1493_v26, %v1332_v8  ;;  %v1349_v18 = vmul.f32 %v1494_v29, %v1333_v49 }
 0x30f   :  { %1380 = vperm.xlu1 %1631, %v1346_v1   ;;  %v1340_v46 = vmul.f32 -14.285714, %v1276_v0  ;;  %v1341_v63 = vmul.f32 -14.285714, %v1277_v21  ;;  %v1501_v31 = vsel %vm1292_vm10, 1.0, %v3369_v24  ;;  %v1502_v30 = vsel %vm1293_vm2, 1.0, %v3369_v24 }
 0x311   :  { %v1356_v38 = vmul.f32 %v1501_v31, %v1340_v46  ;;  %v1357_v40 = vmul.f32 %v1502_v30, %v1341_v63 }
 0x312   :  { %1425 = vperm.xlu0 %1630, %v1355_v54  }
 0x313   :  { %1420 = vperm.xlu1 %1631, %v1354_v28  }
 0x316   :  { %1395 = vperm.xlu0 %1630, %v1349_v18  }
 0x317   :  { %1390 = vperm.xlu1 %1631, %v1348_v53  }
 0x31a   :  { %1435 = vperm.xlu0 %1630, %v1357_v40  }
 0x31b   :  { %1430 = vperm.xlu1 %1631, %v1356_v38  }
 0x35c   :  { %v1366_v32 = vpop.permute.xlu1 %1365 }
 0x35d   :  { %1439 = vst [vmem:[#allocation9 + $0x8] sm:$0xff] %v1366_v32 }
 0x379   :  { %v1406_v62 = vpop.permute.xlu0 %1405 }
 0x37a   :  { %1447 = vst [vmem:[#allocation9 + $0x48] sm:$0xff] %v1406_v62 }
 0x37d   :  { %v1361_v19 = vpop.permute.xlu0 %1360 }
 0x37e   :  { %v1401_v61 = vpop.permute.xlu1 %1400  ;;  %1438 = vst [vmem:[#allocation9] sm:$0xff] %v1361_v19 }
 0x37f   :  { %1446 = vst [vmem:[#allocation9 + $0x40] sm:$0xff] %v1401_v61 }
 0x381   :  { %v1376_v37 = vpop.permute.xlu0 %1375 }
 0x382   :  { %v1371_v2 = vpop.permute.xlu1 %1370  ;;  %1441 = vst [vmem:[#allocation9 + $0x18] sm:$0xff] %v1376_v37 }
 0x383   :  { %1440 = vst [vmem:[#allocation9 + $0x10] sm:$0xff] %v1371_v2 }
 0x385   :  { %v1416_v9 = vpop.permute.xlu0 %1415 }
 0x386   :  { %v1411_v34 = vpop.permute.xlu1 %1410  ;;  %1449 = vst [vmem:[#allocation9 + $0x58] sm:$0xff] %v1416_v9 }
 0x387   :  { %1448 = vst [vmem:[#allocation9 + $0x50] sm:$0xff] %v1411_v34 }
 0x389   :  { %v1386_v24 = vpop.permute.xlu0 %1385 }
 0x38a   :  { %v1381_v10 = vpop.permute.xlu1 %1380  ;;  %1443 = vst [vmem:[#allocation9 + $0x28] sm:$0xff] %v1386_v24 }
 0x38b   :  { %1442 = vst [vmem:[#allocation9 + $0x20] sm:$0xff] %v1381_v10 }
 0x38d   :  { %v1426_v45 = vpop.permute.xlu0 %1425 }
 0x38e   :  { %v1421_v56 = vpop.permute.xlu1 %1420  ;;  %1451 = vst [vmem:[#allocation9 + $0x68] sm:$0xff] %v1426_v45 }
 0x38f   :  { %1450 = vst [vmem:[#allocation9 + $0x60] sm:$0xff] %v1421_v56 }
 0x391   :  { %v1396_v23 = vpop.permute.xlu0 %1395 }
 0x392   :  { %v1391_v33 = vpop.permute.xlu1 %1390  ;;  %1445 = vst [vmem:[#allocation9 + $0x38] sm:$0xff] %v1396_v23 }
 0x393   :  { %1444 = vst [vmem:[#allocation9 + $0x30] sm:$0xff] %v1391_v33 }
 0x395   :  { %v1436_v55 = vpop.permute.xlu0 %1435 }
 0x396   :  { %v1431_v12 = vpop.permute.xlu1 %1430  ;;  %1453 = vst [vmem:[#allocation9 + $0x78] sm:$0xff] %v1436_v55 }
 0x397   :  { %1452 = vst [vmem:[#allocation9 + $0x70] sm:$0xff] %v1431_v12 }
 0x398   :  { %1807 = shalt.err (!%p1804_p9)
}
 0x399   :  { %1465 = dma.vmem_to_hbm [thread:$0]  %s1460_s14, 2048, %s3131_s4, [#allocation8], %s1821_s18, %s1821_s18, %s1822_s19  }
 0x39a   :  { %1818 = dma.done.wait [#allocation8], 2048  }
 0x39b   :  { %1819 = vsyncadd [#allocation8], 4294965248 }
 0x39c   :  { %1469 = vsyncpa [#allocation7], 1 }
 0x39d   :  { %1470 = vsyncpa [#allocation8], 1 }

</bundles_post_ra>
